<compile_context>
chip_gen: v7x
topology: tpu7x:2x2x1
jax: 0.10.0
libtpu: 0.0.40
codegen_flags: <defaults>
</compile_context>

<pallas_src>
import jax
import jax.numpy as jnp
from jax.experimental import pallas as pl
from jax.experimental.pallas import tpu as pltpu


def _round_up(x, m):
    return ((x + m - 1) // m) * m


def _log_sigmoid(x):
    # numerically stable log(sigmoid(x)) = min(x, 0) - log1p(exp(-|x|))
    return jnp.minimum(x, 0.0) - jnp.log1p(jnp.exp(-jnp.abs(x)))


def _pick_block_b(b, k, d, itemsize, vmem_budget_bytes=8 << 20):
    """Largest batch tile whose double-buffered inputs fit the VMEM budget."""
    per_row = (k * d + 2 * d) * itemsize          # neg (K,D) + u (D) + v (D)
    tb = vmem_budget_bytes // (2 * per_row)       # 2x for double buffering
    tb = max(8, min(int(tb), 512))                # >=8 sublanes; >512 rows ~flat
    tb = (tb // 8) * 8
    return min(tb, _round_up(b, 8))


def skipgram_loss_kernel(n_ref, emb_u_ref, emb_v_ref, emb_neg_ref, out_ref):
    """One batch tile: per-row SGNS loss, masked sum -> per-tile partial."""
    u = emb_u_ref[...].astype(jnp.float32)          # (TB, D)
    v = emb_v_ref[...].astype(jnp.float32)          # (TB, D)
    neg = emb_neg_ref[...].astype(jnp.float32)      # (TB, K, D)

    tb = u.shape[0]

    # positive score: sum(u * v, dim=-1), clamp, -logsigmoid
    pos_score = jnp.sum(u * v, axis=1, keepdims=True)              # (TB, 1)
    pos_score = jnp.clip(pos_score, -10.0, 10.0)
    pos_loss = -_log_sigmoid(pos_score)                            # (TB, 1)

    # negative score: bmm(neg, u) -> (TB, K); elementwise mul + lane reduce
    # stays on the VPU/XLU (the kernel is HBM-bound, MXU would not help).
    neg_logits = jnp.sum(neg * u[:, None, :], axis=-1)             # (TB, K)
    neg_logits = jnp.clip(neg_logits, -10.0, 10.0)
    neg_loss = -jnp.sum(_log_sigmoid(-neg_logits), axis=1,
                        keepdims=True)                             # (TB, 1)

    per_row = pos_loss + neg_loss                                  # (TB, 1)

    # mask padded rows of the (possibly ragged) last tile
    row0 = pl.program_id(0) * tb
    rows = row0 + jax.lax.broadcasted_iota(jnp.int32, (tb, 1), 0)
    valid = rows < n_ref[0]
    partial = jnp.sum(jnp.where(valid, per_row, 0.0))              # scalar

    # lane-dense per-tile partial; each grid step owns its own output block,
    # so this is a full unmasked (8,128) vector store.
    out_ref[...] = jnp.full(out_ref.shape, partial, dtype=jnp.float32)


def skipgram_loss(emb_u, emb_v, emb_neg_v, *, n_valid=None, block_b=None):
    """Mean SGNS loss over the first n_valid rows of the (padded) batch."""
    b, d = emb_u.shape
    k = emb_neg_v.shape[1]
    itemsize = jnp.dtype(emb_u.dtype).itemsize
    if n_valid is None:
        n_valid = b
    if block_b is None:
        block_b = _pick_block_b(b, k, d, itemsize)
    if b % block_b != 0:
        raise ValueError(f"batch {b} must be a multiple of block_b {block_b}")
    num_tiles = b // block_b

    in_bytes = 2 * block_b * (k * d + 2 * d) * itemsize   # double-buffered inputs
    tmp_bytes = 2 * block_b * k * d * 4                   # f32 upcast temporaries
    vmem_limit = min(in_bytes + tmp_bytes + (8 << 20), 48 << 20)

    # Advisory cost hint for XLA's scheduler around the custom call.
    flops_per_row = 2 * d + k * 2 * d + 6 * (k + 1)       # dots + clamp/logsig
    cost = pl.CostEstimate(
        flops=b * flops_per_row,
        transcendentals=b * 2 * (k + 1),                  # exp + log1p per logit
        bytes_accessed=(b * (2 * d + k * d) * itemsize
                        + num_tiles * 8 * 128 * 4),
    )

    n_arr = jnp.asarray([n_valid], dtype=jnp.int32)

    partials = pl.pallas_call(
        skipgram_loss_kernel,
        out_shape=jax.ShapeDtypeStruct((num_tiles, 8, 128), jnp.float32),
        grid_spec=pltpu.PrefetchScalarGridSpec(
            num_scalar_prefetch=1,
            grid=(num_tiles,),
            in_specs=[
                pl.BlockSpec((block_b, d), lambda i, n: (i, 0)),
                pl.BlockSpec((block_b, d), lambda i, n: (i, 0)),
                pl.BlockSpec((block_b, k, d), lambda i, n: (i, 0, 0)),
            ],
            out_specs=pl.BlockSpec((1, 8, 128), lambda i, n: (i, 0, 0)),
        ),
        compiler_params=pltpu.CompilerParams(
            dimension_semantics=("parallel",),
            vmem_limit_bytes=int(vmem_limit),
        ),
        cost_estimate=cost,
    )(n_arr, emb_u, emb_v, emb_neg_v)

    return jnp.sum(partials[:, 0, 0]) / jnp.float32(n_valid)


def skipgram_forward(u_weight, v_weight, pos_u, pos_v, neg_v, *, block_b=None):
    """Full forward: pad indices -> gather (bf16) -> Pallas loss kernel."""
    b = pos_u.shape[0]
    k = neg_v.shape[1]
    d = u_weight.shape[1]
    itemsize = jnp.dtype(u_weight.dtype).itemsize
    if block_b is None:
        block_b = _pick_block_b(b, k, d, itemsize)
    b_pad = _round_up(b, block_b)
    if b_pad != b:
        pad = b_pad - b
        pos_u = jnp.pad(pos_u, (0, pad))          # padded rows masked in-kernel
        pos_v = jnp.pad(pos_v, (0, pad))
        neg_v = jnp.pad(neg_v, ((0, pad), (0, 0)))
    # Embedding gathers left to XLA on bf16 tables (half the HBM bytes).
    emb_u = jnp.take(u_weight, pos_u, axis=0)         # (Bpad, D)
    emb_v = jnp.take(v_weight, pos_v, axis=0)         # (Bpad, D)
    emb_neg_v = jnp.take(v_weight, neg_v, axis=0)     # (Bpad, K, D)
    return skipgram_loss(emb_u, emb_v, emb_neg_v, n_valid=b, block_b=block_b)


class SkipGramModelJAX:
    """JAX re-implementation of the PyTorch SkipGramModel forward."""

    def __init__(self, emb_size, emb_dim, key, sparse=False):
        del sparse  # layout hint for torch optimizers; irrelevant here
        self.emb_size = emb_size
        self.emb_dim = emb_dim
        initrange = 1.0 / emb_dim
        # u_embeddings ~ U(-1/emb_dim, 1/emb_dim); v_embeddings = 0 (as in torch)
        self.u_weight = jax.random.uniform(
            key, (emb_size, emb_dim), dtype=jnp.float32,
            minval=-initrange, maxval=initrange).astype(jnp.bfloat16)
        self.v_weight = jnp.zeros((emb_size, emb_dim), dtype=jnp.bfloat16)

    def forward(self, pos_u, pos_v, neg_v):
        return skipgram_forward(self.u_weight, self.v_weight,
                                pos_u, pos_v, neg_v)


def _reference_loss(u_w, v_w, pos_u, pos_v, neg_v):
    emb_u = u_w[pos_u].astype(jnp.float32)
    emb_v = v_w[pos_v].astype(jnp.float32)
    emb_neg = v_w[neg_v].astype(jnp.float32)
    score = jnp.clip(jnp.sum(emb_u * emb_v, axis=1), -10.0, 10.0)
    score = -jax.nn.log_sigmoid(score)
    neg = jnp.clip(jnp.sum(emb_neg * emb_u[:, None, :], axis=-1), -10.0, 10.0)
    neg_score = -jnp.sum(jax.nn.log_sigmoid(-neg), axis=1)
    return jnp.mean(score + neg_score)


if __name__ == "__main__":
    key = jax.random.PRNGKey(0)
    k_u_tab, k_v_tab, k_model, k_pu, k_pv, k_neg = jax.random.split(key, 6)

    EMB_SIZE = 512   # vocabulary size
    EMB_DIM = 128    # embedding dimension (lane-dense)
    B = 100          # batch (not a tile multiple -> exercises masking)
    K = 8            # negatives per sample

    pos_u = jax.random.randint(k_pu, (B,), 0, EMB_SIZE, dtype=jnp.int32)
    pos_v = jax.random.randint(k_pv, (B,), 0, EMB_SIZE, dtype=jnp.int32)
    neg_v = jax.random.randint(k_neg, (B, K), 0, EMB_SIZE, dtype=jnp.int32)

    # 1) check against the reference with non-trivial tables (the real model
    #    inits v to zero, which would make the dot products trivially zero),
    #    forcing multiple batch tiles + a ragged masked last tile.
    u_tab = (0.3 * jax.random.normal(k_u_tab, (EMB_SIZE, EMB_DIM),
                                     jnp.float32)).astype(jnp.bfloat16)
    v_tab = (0.3 * jax.random.normal(k_v_tab, (EMB_SIZE, EMB_DIM),
                                     jnp.float32)).astype(jnp.bfloat16)
    loss = skipgram_forward(u_tab, v_tab, pos_u, pos_v, neg_v, block_b=32)
    jax.block_until_ready(loss)
    ref = _reference_loss(u_tab, v_tab, pos_u, pos_v, neg_v)
    assert jnp.allclose(loss, ref, atol=1e-4, rtol=1e-4), (loss, ref)

    # 2) the faithful module (u ~ U(-1/D, 1/D), v = 0), auto-picked tile size.
    model = SkipGramModelJAX(EMB_SIZE, EMB_DIM, k_model)
    loss2 = model.forward(pos_u, pos_v, neg_v)
    jax.block_until_ready(loss2)
    ref2 = _reference_loss(model.u_weight, model.v_weight, pos_u, pos_v, neg_v)
    assert jnp.allclose(loss2, ref2, atol=1e-4, rtol=1e-4), (loss2, ref2)

    print("KERNEL_OK")
</pallas_src>

<mosaic_0001>
module attributes {stable_mosaic.version = 11 : i64} {
  func.func @skipgram_loss_kernel(%arg0: i32, %arg1: memref<1xi32, #tpu.memory_space<smem>>, %arg2: memref<32x128xbf16, #tpu.memory_space<vmem>>, %arg3: memref<32x128xbf16, #tpu.memory_space<vmem>>, %arg4: memref<32x8x128xbf16, #tpu.memory_space<vmem>>, %arg5: memref<1x8x128xf32, #tpu.memory_space<vmem>>) attributes {dimension_semantics = [#tpu.dimension_semantics<parallel>], iteration_bounds = array<i64: 4>, scalar_prefetch = 1 : i64, scratch_operands = 0 : i64, tpu.core_type = #tpu.core_type<tc>, window_params = [{transform_indices = @transform_0, window_bounds = array<i64: 32, 128>}, {transform_indices = @transform_1, window_bounds = array<i64: 32, 128>}, {transform_indices = @transform_2, window_bounds = array<i64: 32, 8, 128>}, {transform_indices = @transform_3, window_bounds = array<i64: 1, 8, 128>}]} {
    %c0 = arith.constant 0 : index
    %c0_0 = arith.constant 0 : index
    %0 = vector.load %arg2[%c0, %c0_0] : memref<32x128xbf16, #tpu.memory_space<vmem>>, vector<32x128xbf16>
    %1 = arith.extf %0 : vector<32x128xbf16> to vector<32x128xf32>
    %c0_1 = arith.constant 0 : index
    %c0_2 = arith.constant 0 : index
    %2 = vector.load %arg3[%c0_1, %c0_2] : memref<32x128xbf16, #tpu.memory_space<vmem>>, vector<32x128xbf16>
    %3 = arith.extf %2 : vector<32x128xbf16> to vector<32x128xf32>
    %c0_3 = arith.constant 0 : index
    %c0_4 = arith.constant 0 : index
    %c0_5 = arith.constant 0 : index
    %4 = vector.load %arg4[%c0_3, %c0_4, %c0_5] : memref<32x8x128xbf16, #tpu.memory_space<vmem>>, vector<32x8x128xbf16>
    %5 = arith.extf %4 : vector<32x8x128xbf16> to vector<32x8x128xf32>
    %6 = arith.mulf %1, %3 : vector<32x128xf32>
    %cst = arith.constant dense<0.000000e+00> : vector<32xf32>
    %7 = vector.multi_reduction <add>, %6, %cst [1] : vector<32x128xf32> to vector<32xf32>
    %8 = vector.shape_cast %7 : vector<32xf32> to vector<32x1xf32>
    %cst_6 = arith.constant -1.000000e+01 : f32
    %cst_7 = arith.constant 1.000000e+01 : f32
    %9 = vector.broadcast %cst_6 : f32 to vector<32x1xf32>
    %10 = arith.maximumf %9, %8 : vector<32x1xf32>
    %11 = vector.broadcast %cst_7 : f32 to vector<32x1xf32>
    %12 = arith.minimumf %11, %10 : vector<32x1xf32>
    %cst_8 = arith.constant 0.000000e+00 : f32
    %13 = vector.broadcast %cst_8 : f32 to vector<32x1xf32>
    %14 = arith.minimumf %12, %13 : vector<32x1xf32>
    %15 = math.absf %12 : vector<32x1xf32>
    %cst_9 = arith.constant 0.000000e+00 : f32
    %16 = vector.broadcast %cst_9 : f32 to vector<32x1xf32>
    %17 = arith.subf %16, %15 : vector<32x1xf32>
    %18 = math.exp %17 : vector<32x1xf32>
    %19 = math.log1p %18 : vector<32x1xf32>
    %20 = arith.subf %14, %19 : vector<32x1xf32>
    %cst_10 = arith.constant 0.000000e+00 : f32
    %21 = vector.broadcast %cst_10 : f32 to vector<32x1xf32>
    %22 = arith.subf %21, %20 : vector<32x1xf32>
    %23 = vector.shape_cast %1 : vector<32x128xf32> to vector<32x1x128xf32>
    %24 = vector.broadcast %23 : vector<32x1x128xf32> to vector<32x8x128xf32>
    %25 = arith.mulf %5, %24 : vector<32x8x128xf32>
    %cst_11 = arith.constant dense<0.000000e+00> : vector<32x8xf32>
    %26 = vector.multi_reduction <add>, %25, %cst_11 [2] : vector<32x8x128xf32> to vector<32x8xf32>
    %cst_12 = arith.constant -1.000000e+01 : f32
    %cst_13 = arith.constant 1.000000e+01 : f32
    %27 = vector.broadcast %cst_12 : f32 to vector<32x8xf32>
    %28 = arith.maximumf %27, %26 : vector<32x8xf32>
    %29 = vector.broadcast %cst_13 : f32 to vector<32x8xf32>
    %30 = arith.minimumf %29, %28 : vector<32x8xf32>
    %cst_14 = arith.constant 0.000000e+00 : f32
    %31 = vector.broadcast %cst_14 : f32 to vector<32x8xf32>
    %32 = arith.subf %31, %30 : vector<32x8xf32>
    %cst_15 = arith.constant 0.000000e+00 : f32
    %33 = vector.broadcast %cst_15 : f32 to vector<32x8xf32>
    %34 = arith.minimumf %32, %33 : vector<32x8xf32>
    %35 = math.absf %32 : vector<32x8xf32>
    %cst_16 = arith.constant 0.000000e+00 : f32
    %36 = vector.broadcast %cst_16 : f32 to vector<32x8xf32>
    %37 = arith.subf %36, %35 : vector<32x8xf32>
    %38 = math.exp %37 : vector<32x8xf32>
    %39 = math.log1p %38 : vector<32x8xf32>
    %40 = arith.subf %34, %39 : vector<32x8xf32>
    %cst_17 = arith.constant dense<0.000000e+00> : vector<32xf32>
    %41 = vector.multi_reduction <add>, %40, %cst_17 [1] : vector<32x8xf32> to vector<32xf32>
    %42 = vector.shape_cast %41 : vector<32xf32> to vector<32x1xf32>
    %cst_18 = arith.constant 0.000000e+00 : f32
    %43 = vector.broadcast %cst_18 : f32 to vector<32x1xf32>
    %44 = arith.subf %43, %42 : vector<32x1xf32>
    %45 = arith.addf %22, %44 : vector<32x1xf32>
    %c32_i32 = arith.constant 32 : i32
    %46 = arith.muli %arg0, %c32_i32 : i32
    %47 = tpu.iota {dimensions = array<i32: 0>} : vector<32x1xi32>
    %48 = vector.broadcast %46 : i32 to vector<32x1xi32>
    %49 = arith.addi %48, %47 : vector<32x1xi32>
    %c0_19 = arith.constant 0 : index
    %50 = memref.load %arg1[%c0_19] : memref<1xi32, #tpu.memory_space<smem>>
    %51 = vector.broadcast %50 : i32 to vector<32x1xi32>
    %52 = arith.cmpi slt, %49, %51 : vector<32x1xi32>
    %cst_20 = arith.constant 0.000000e+00 : f32
    %53 = vector.broadcast %cst_20 : f32 to vector<32x1xf32>
    %54 = arith.select %52, %45, %53 : vector<32x1xi1>, vector<32x1xf32>
    %55 = vector.shape_cast %54 : vector<32x1xf32> to vector<1x32x1xf32>
    %cst_21 = arith.constant dense<0.000000e+00> : vector<1xf32>
    %56 = vector.multi_reduction <add>, %55, %cst_21 [1, 2] : vector<1x32x1xf32> to vector<1xf32>
    %57 = vector.shape_cast %56 : vector<1xf32> to vector<1x1x1xf32>
    %58 = vector.extract %57[0, 0, 0] : f32 from vector<1x1x1xf32>
    %59 = vector.broadcast %58 : f32 to vector<1x8x128xf32>
    %c0_22 = arith.constant 0 : index
    %c0_23 = arith.constant 0 : index
    %c0_24 = arith.constant 0 : index
    %60 = vector.load %arg5[%c0_22, %c0_23, %c0_24] : memref<1x8x128xf32, #tpu.memory_space<vmem>>, vector<1x8x128xf32>
    tpu.vector_store %arg5[%c0_22, %c0_23, %c0_24], %59 {strides = array<i32>} : memref<1x8x128xf32, #tpu.memory_space<vmem>>, vector<1x8x128xf32>,
    return
  }
  func.func @transform_0(%arg0: i32, %arg1: memref<1xi32, #tpu.memory_space<smem>>) -> (i32, i32) {
    %c0_i32 = arith.constant 0 : i32
    %c0_i32_0 = arith.constant 0 : i32
    return %arg0, %c0_i32 : i32, i32
  }
  func.func @transform_1(%arg0: i32, %arg1: memref<1xi32, #tpu.memory_space<smem>>) -> (i32, i32) {
    %c0_i32 = arith.constant 0 : i32
    %c0_i32_0 = arith.constant 0 : i32
    return %arg0, %c0_i32 : i32, i32
  }
  func.func @transform_2(%arg0: i32, %arg1: memref<1xi32, #tpu.memory_space<smem>>) -> (i32, i32, i32) {
    %c0_i32 = arith.constant 0 : i32
    %c0_i32_0 = arith.constant 0 : i32
    %c0_i32_1 = arith.constant 0 : i32
    return %arg0, %c0_i32, %c0_i32_0 : i32, i32, i32
  }
  func.func @transform_3(%arg0: i32, %arg1: memref<1xi32, #tpu.memory_space<smem>>) -> (i32, i32, i32) {
    %c0_i32 = arith.constant 0 : i32
    %c0_i32_0 = arith.constant 0 : i32
    %c0_i32_1 = arith.constant 0 : i32
    return %arg0, %c0_i32, %c0_i32_0 : i32, i32, i32
  }
}

</mosaic_0001>

<bundles_post_ra>
// kernel: tpu_custom_call.1
= control target key start
LH: loop header
LB: loop body
LE: loop exit
PB: predicated region body
PF: predicated region fallthrough
CT: control target
= control target key end

     0   :  { %s3572_s0 = inlined_call_operand.<no memory space> [shape: s32[1], index: 0, kind: input, shape index: {}]   ;;  %s3573_s1 = inlined_call_operand.hbm [shape: bf16[128,128], index: 1, kind: input, shape index: {}]   ;;  %s3574_s2 = inlined_call_operand.hbm [shape: bf16[128,128], index: 2, kind: input, shape index: {}]   ;;  %s3575_s3 = inlined_call_operand.hbm [shape: bf16[128,8,128], index: 3, kind: input, shape index: {}]   ;;  %s3576_s4 = inlined_call_operand.hbm [shape: f32[4,8,128], index: 4, kind: output, shape index: {}]  }
   0x1   :  { %3583 = sst [smem:[#allocation14_spill]] %s3573_s1 }
   0x2   :  { %9 = sst [smem:[#allocation3]] %s3572_s0 }
   0x3   :  { %10 = vsyncpa [#allocation5], 0 }
   0x4   :  { %12 = vsyncpa [#allocation5 + $0x1], 0 }
   0x5   :  { %13 = vsyncpa [#allocation8], 0 }
   0x6   :  { %15 = vsyncpa [#allocation8 + $0x1], 0 }
   0x7   :  { %16 = vsyncpa [#allocation6], 0 }
   0x8   :  { %18 = vsyncpa [#allocation6 + $0x1], 0  ;;  %s2416_s17 = smov 0   ;;  %s2418_s18 = smov 0  }
   0x9   :  { %s2420_s19 = smov 0   ;;  %s2422_s20 = smov 0  }
   0xa LB: > { %s2437_s0 = sadd.s32 4294967295, %s2379_s20   ;;  %s1856_s21 = sadd.s32 4294967294, %s2379_s20   ;;  %s2379_s20 = sphi %s2422_s20, %s3672_s20   ;;  %s2375_s19 = sphi %s2420_s19, %s3671_s19   ;;  %s2371_s18 = sphi %s2418_s18, %s3670_s18   ;;  %s2367_s17 = sphi %s2416_s17, %s3669_s17  }
   0xb   : > { %s2441_s22 = sadd.s32 1, %s2379_s20   ;;  %s31_s23 = sadd.s32 1, %s2375_s19 }
   0xc   : > { %s28_s24 = ssub.s32 %s2379_s20, %s2441_s22  ;;  %p38_p0 = scmp.ne.s32.totalorder %s2375_s19, %s2371_s18 }
   0xd   : > { %p29_p1 = scmp.eq.s32.totalorder %s28_s24, 0  ;;  %p39_p2 = scmp.eq.s32.totalorder %s2379_s20, 0 }
   0xe   : > { %p44_p3 = scmp.ne.s32.totalorder %s2371_s18, %s2367_s17  ;;  %p45_p4 = scmp.eq.s32.totalorder %s2437_s0, 0 }
   0xf   : > { %s2453_s25 = scalar_select %p29_p1, %s2375_s19, %s31_s23  }
  0x10   : > { %p40_p5 = por %p39_p2, %p38_p0  ;;  %p2455_p6 = por %p45_p4, %p44_p3 }
  0x11   : > { %p120_p7 = scmp.eq.s32.totalorder %s2437_s0, 3  ;;  %p126_p8 = scmp.eq.s32.totalorder %s1856_s21, 3 }
  0x12   : > { %s3584_s26 = scalar_select %p2455_p6, 1, 0 }
  0x13   : > { %p2038_p9 = scmp.lt.s32.totalorder %s2379_s20, 4  ;;  %p2461_p10 = por %p120_p7, %p38_p0 }
  0x14   : > { %p2465_p11 = por %p126_p8, %p44_p3  ;;  %s2470_s29 = sand.u32 1, %s2375_s19  }
  0x15   : > { %s3585_s27 = scalar_select %p2461_p10, 1, 0 }
  0x16   : > { %s3586_s28 = scalar_select %p2465_p11, 1, 0 }
  0x17   : > { %s1914_s30 = sshll.u32 %s2379_s20, 8  ;;  %s1859_s5 = sshll.u32 %s2470_s29, 4 }
  0x18   : > { %p2474_p12 = pnand %p2038_p9, %p40_p5  ;;  %s167_s7 = sand.u32 1, %s2379_s20  }
  0x19   : > { %s2484_s10 = scalar_lea.hbm %s3574_s2, %s1914_s30  ;;  %s171_s11 = scalar_lea.vmem [#allocation7], %s1859_s5 }
  0x1a   : > { %s178_s12 = sshll.u32 %s171_s11, 4  ;;  %s2491_s13 = scalar_lea.sflag [#allocation8], %s167_s7  ;;  %s2488_s12 = int_to_ptr.vmem [resolvable:$true] %s178_s12 }
  0x1b   : > { %s2219_s14 = scalar_lea.hbm %s2484_s10, 256  ;;  %p2497_p1 = pneg %p2474_p12 }
  0x1c   : > { %p2220_p0 = scmp.ne.s32.totalorder %s2484_s10, %s2219_s14  ;;  %s2224_s23 = scalar_lea.hbm %s3574_s2, 1024 }
  0x1d   : > { %p2225_p4 = scmp.lt.u32.totalorder %s2484_s10, %s3574_s2  ;;  %p2226_p5 = scmp.lt.u32.totalorder %s2224_s23, %s2219_s14 }
  0x1e   : > { %p2222_p2 = pnand %p2497_p1, %p2220_p0  ;;  %p2228_p8 = scmp.lt.u32.totalorder %s2219_s14, %s2484_s10 }
  0x1f   : > { %p2227_p7 = por %p2226_p5, %p2225_p4 }
  0x20   : > { %p2223_p3 = pneg %p2222_p2 }
  0x21   : > { %p2229_p9 = por %p2228_p8, %p2227_p7 }
  0x23   : > { %p2230_p13 = pnand %p2229_p9, %p2223_p3 }
  0x25   : > { %2233 = shalt.err (!%p2230_p13)
}
  0x26   : > { %s2234_s7 = scalar_lea.vmem %s2488_s12, 256  ;;  %s2381_s9 = smov [#allocation7]  }
  0x27   : > { %p2235_p0 = scmp.ne.s32.totalorder %s2488_s12, %s2234_s7  ;;  %s2239_s11 = sshll.u32 %s2381_s9, 4  ;;  %s2240_s11 = int_to_ptr.vmem [resolvable:$false] %s2239_s11 }
  0x28   : > { %s2241_s16 = scalar_lea.vmem %s2240_s11, 512  ;;  %p2242_p10 = scmp.lt.s32.totalorder %s2488_s12, %s2240_s11 }
  0x29   : > { %p2237_p2 = pnand %p2235_p0, %p2497_p1  ;;  %p2243_p6 = scmp.lt.s32.totalorder %s2241_s16, %s2234_s7 }
  0x2b   : > { %p2238_p11 = pneg %p2237_p2  ;;  %p2244_p4 = por %p2243_p6, %p2242_p10 }
  0x2d   : > { %p2245_p5 = pnand %p2244_p4, %p2238_p11 }
  0x2f   : > { %2248 = shalt.err (!%p2245_p5)
}
  0x30   : > { %s3579_s14 = smov 64   ;;  %s3581_s21 = smov 4  }
  0x31   : > { %2030 = dma.hbm_to_vmem [thread:$0]  (!%p2474_p12), %s2484_s10, 256, %s2488_s12, %s2491_s13, %s3579_s14, %s3579_s14, %s3581_s21  }
  0x32   : > { %p207_p6 = scmp.lt.s32.totalorder %s2379_s20, 5  ;;  %s3589_s1 = sld [smem:[#allocation14_spill]] }
  0x33   : > { %p3590_p10 = scmp.ge.s32.totalorder %s2379_s20, 1  ;;  %s150_s9 = scalar_lea.vmem [#allocation4], %s1859_s5 }
  0x34   : > { %s157_s11 = sshll.u32 %s150_s9, 4  ;;  %s1865_s10 = sshll.u32 %s2470_s29, 7  ;;  %s2540_s11 = int_to_ptr.vmem [resolvable:$true] %s157_s11 }
  0x35   : > { %p2534_p11 = pnand %p3590_p10, %p207_p6  ;;  %s147_s12 = scalar_lea.sflag [#allocation5], %s2470_s29 }
  0x37   : > { %s3591_s7 = scalar_select %p2534_p11, 1, 0 }
  0x38   : > { %s2530_s8 = scalar_lea.hbm %s3589_s1, %s1914_s30  ;;  %s2254_s24 = scalar_lea.hbm %s3589_s1, 1024 }
  0x39   : > { %s2249_s16 = scalar_lea.hbm %s2530_s8, 256  ;;  %p2255_p8 = scmp.lt.u32.totalorder %s2530_s8, %s3589_s1 }
  0x3a   : > { %p2250_p13 = scmp.ne.s32.totalorder %s2530_s8, %s2249_s16  ;;  %p2256_p9 = scmp.lt.u32.totalorder %s2254_s24, %s2249_s16 }
  0x3b   : > { %p2258_p2 = scmp.lt.u32.totalorder %s2249_s16, %s2530_s8 }
  0x3c   : > { %p2252_p3 = pnand %p2250_p13, %p2497_p1  ;;  %p2257_p0 = por %p2256_p9, %p2255_p8 }
  0x3e   : > { %p2253_p7 = pneg %p2252_p3  ;;  %p2259_p4 = por %p2258_p2, %p2257_p0 }
  0x40   : > { %p2260_p5 = pnand %p2259_p4, %p2253_p7 }
  0x42   : > { %2263 = shalt.err (!%p2260_p5)
}
  0x43   : > { %s2264_s5 = scalar_lea.vmem %s2540_s11, 256  ;;  %s2384_s9 = smov [#allocation4]  }
  0x44   : > { %p2265_p6 = scmp.ne.s32.totalorder %s2540_s11, %s2264_s5  ;;  %s2269_s30 = sshll.u32 %s2384_s9, 4  ;;  %s2270_s30 = int_to_ptr.vmem [resolvable:$false] %s2269_s30 }
  0x45   : > { %s2271_s14 = scalar_lea.vmem %s2270_s30, 512  ;;  %p2272_p3 = scmp.lt.s32.totalorder %s2540_s11, %s2270_s30 }
  0x46   : > { %p2267_p10 = pnand %p2265_p6, %p2497_p1  ;;  %p2273_p11 = scmp.lt.s32.totalorder %s2271_s14, %s2264_s5 }
  0x48   : > { %p2268_p13 = pneg %p2267_p10  ;;  %p2274_p8 = por %p2273_p11, %p2272_p3 }
  0x4a   : > { %p2275_p9 = pnand %p2274_p8, %p2268_p13 }
  0x4c   : > { %2278 = shalt.err (!%p2275_p9)
}
  0x4d   : > { %s3592_s21 = smov 4   ;;  %s3593_s16 = smov 64  }
  0x4e   : > { %2027 = dma.hbm_to_vmem [thread:$0]  (!%p2474_p12), %s2530_s8, 256, %s2540_s11, %s147_s12, %s3593_s16, %s3593_s16, %s3592_s21  }
  0x4f   : > { %s1916_s23 = sshll.u32 %s2379_s20, 11  ;;  %s192_s30 = scalar_lea.vmem [#allocation9], %s1865_s10 }
  0x50   : > { %s2574_s5 = scalar_lea.hbm %s3575_s3, %s1916_s23  ;;  %s199_s14 = sshll.u32 %s192_s30, 4  ;;  %s2578_s14 = int_to_ptr.vmem [resolvable:$true] %s199_s14 }
  0x51   : > { %s2279_s1 = scalar_lea.hbm %s2574_s5, 2048  ;;  %s2284_s12 = scalar_lea.hbm %s3575_s3, 8192 }
  0x52   : > { %p2280_p11 = scmp.ne.s32.totalorder %s2574_s5, %s2279_s1  ;;  %p2285_p2 = scmp.lt.u32.totalorder %s2574_s5, %s3575_s3 }
  0x53   : > { %p2286_p4 = scmp.lt.u32.totalorder %s2284_s12, %s2279_s1  ;;  %p2288_p6 = scmp.lt.u32.totalorder %s2279_s1, %s2574_s5 }
  0x54   : > { %p2282_p7 = pnand %p2280_p11, %p2497_p1 }
  0x55   : > { %p2287_p5 = por %p2286_p4, %p2285_p2 }
  0x56   : > { %p2283_p0 = pneg %p2282_p7 }
  0x57   : > { %p2289_p10 = por %p2288_p6, %p2287_p5 }
  0x59   : > { %p2290_p13 = pnand %p2289_p10, %p2283_p0 }
  0x5b   : > { %2293 = shalt.err (!%p2290_p13)
}
  0x5c   : > { %s2294_s29 = scalar_lea.vmem %s2578_s14, 2048  ;;  %s2385_s10 = smov [#allocation9]  }
  0x5d   : > { %p2295_p3 = scmp.ne.s32.totalorder %s2578_s14, %s2294_s29  ;;  %s2299_s9 = sshll.u32 %s2385_s10, 4  ;;  %s2300_s9 = int_to_ptr.vmem [resolvable:$false] %s2299_s9 }
  0x5e   : > { %s2301_s30 = scalar_lea.vmem %s2300_s9, 4096  ;;  %p2302_p11 = scmp.lt.s32.totalorder %s2578_s14, %s2300_s9 }
  0x5f   : > { %p2297_p8 = pnand %p2295_p3, %p2497_p1  ;;  %p2303_p7 = scmp.lt.s32.totalorder %s2301_s30, %s2294_s29 }
  0x61   : > { %p2298_p9 = pneg %p2297_p8  ;;  %p2304_p2 = por %p2303_p7, %p2302_p11 }
  0x63   : > { %p2305_p4 = pnand %p2304_p2, %p2298_p9 }
  0x65   : > { %2308 = shalt.err (!%p2305_p4)
}
  0x66   : > { %2033 = dma.hbm_to_vmem [thread:$0]  (!%p2474_p12), %s2574_s5, 2048, %s2578_s14, %s2491_s13, %s3593_s16, %s3593_s16, %s3592_s21  }
  0x67   : > { %p3594_p1 = scmp.ne.s32.totalorder %s3591_s7, 0 }
  0x68   : > { %s2608_s1 = sand.u32 (!%p3594_p1), 1, %s2371_s18   ;;  %p3595_p0 = scmp.ne.s32.totalorder (!%p3594_p1), %s3584_s26, 0 }
  0x69   : > { %211 = sbr.rel (%p3594_p1) target bundleno = 807 (0x327), region = 32  ;;  %s1869_s15 = sshll.u32 (!%p3594_p1), %s2608_s1, 4 }
  0x6a   : > { %s214_s8 = scalar_lea.sflag (!%p3594_p1), [#allocation5], %s2608_s1  ;;  %s217_s11 = scalar_lea.vmem (!%p3594_p1), [#allocation4], %s1869_s15 }
  0x70   : > { %2354 = dma.done.wait (%p3595_p0), %s214_s8, 256  }
  0x71   : > { %2356 = vsyncadd (%p3595_p0), %s214_s8, 4294967040  ;;  %s222_s6 = sand.u32 1, %s2437_s0   ;;  %s2617_s7 = scalar_lea.vmem [#allocation7], %s1869_s15 }
  0x72   : > { %s223_s13 = scalar_lea.sflag [#allocation8], %s222_s6 }
  0x73   : > { %2358 = dma.done.wait (%p3595_p0), %s223_s13, 2304  }
  0x74   : > { %2360 = vsyncadd (%p3595_p0), %s223_s13, 4294964992  ;;  %v443_v0 = vlaneseq  ;;  %v2386_v1 = vmov 1966171168   ;;  %s1871_s21 = sshll.u32 %s2608_s1, 7  ;;  %v1918_v6 = vld [vmem:[%s217_s11] sm:$0xff]   ;;  %v2638_v11 = vld [vmem:[%s217_s11 + $0x8] sm:$0xff]  }
  0x75   : > { %v441_v2 = vunpack.c.l.s4 %v2386_v1  ;;  %v2630_v7 = vunpack.c.h.bf16 %v1918_v6  ;;  %s2632_s16 = scalar_lea.vmem [#allocation9], %s1871_s21  ;;  %v2635_v9 = vunpack.c.l.bf16 %v1918_v6  ;;  %v2641_v12 = vunpack.c.l.bf16 %v2638_v11  ;;  %s1700_s26 = sld [smem:[#allocation3]] }
  0x76   : > { %v2625_v3 = vshrl.u32 %v443_v0, 7  ;;  %v2002_v8 = vld [vmem:[%s2632_s16 + $0x20] sm:$0xff]   ;;  %v2659_v27 = vld [vmem:[%s2632_s16 + $0x28] sm:$0xff]   ;;  %v2004_v52 = vld [vmem:[%s2632_s16 + $0x30] sm:$0xff]   ;;  %vm1629_vm6 = vcmask 1041409   ;;  %vm1631_vm8 = vcmask 1042434  }
  0x77   : > { %v442_v4 = vunpack.c.0.s8 %v441_v2  ;;  %v1934_v10 = vld [vmem:[%s2632_s16] sm:$0xff]   ;;  %v1951_v17 = vunpack.c.l.bf16 %v2002_v8  ;;  %v1952_v19 = vunpack.c.h.bf16 %v2002_v8  ;;  %v488_v29 = vcombine.high %v2630_v7, %v2630_v7  ;;  %v1999_v48 = vld [vmem:[%s2632_s16 + $0x8] sm:$0xff]   ;;  %v2000_v54 = vld [vmem:[%s2632_s16 + $0x10] sm:$0xff]   ;;  %s1909_s5 = sshll.u32 %s2437_s0, 5  ;;  %s1872_s14 = sshll.u32 %s2608_s1, 3 }
  0x78   : > { %v2646_v14 = vsub.s32 0, %v2625_v3  ;;  %v2006_v16 = vld [vmem:[%s2632_s16 + $0x40] sm:$0xff]   ;;  %v1935_v18 = vunpack.c.l.bf16 %v1934_v10  ;;  %v1955_v39 = vunpack.c.l.bf16 %v2659_v27  ;;  %v1936_v46 = vunpack.c.h.bf16 %v1934_v10  ;;  %s267_s12 = scalar_lea.vmem [#allocation10], %s1872_s14  ;;  %s1911_s24 = sshll.u32 %s2437_s0, 7 }
  0x79   : > { %v2628_v5 = vsub.s32 %v442_v4, %v2625_v3  ;;  %v1967_v25 = vunpack.c.l.bf16 %v2006_v16  ;;  %v439_v49 = vcombine.high %v2635_v9, %v2635_v9  ;;  %v1968_v50 = vunpack.c.h.bf16 %v2006_v16  ;;  %s1743_s23 = sshll.u32 %s267_s12, 4  ;;  %s3531_s30 = scalar_lea.hbm %s3576_s4, %s1911_s24  ;;  %s3526_s23 = int_to_ptr.vmem [resolvable:$true] %s1743_s23 }
  0x7a   : > { %v1939_v58 = vunpack.c.l.bf16 %v1999_v48  ;;  %v1959_v61 = vunpack.c.l.bf16 %v2004_v52  ;;  %v1943_v62 = vunpack.c.l.bf16 %v2000_v54  ;;  %vm1633_vm13 = vcmask 1043459   ;;  %s1730_s15 = scalar_lea.sflag [#allocation6], %s2608_s1  ;;  %s2309_s8 = scalar_lea.vmem %s3526_s23, 128 }
  0x7b   : > { %v495_v13 = vrot.slane %v2630_v7, %v2628_v5  ;;  %v446_v15 = vrot.slane %v2635_v9, %v2628_v5  ;;  %v544_v20 = vrot.slane %v2641_v12, %v2628_v5  ;;  %v502_v43 = vrot.slane %v488_v29, %v2628_v5  ;;  %p2310_p12 = scmp.ne.s32.totalorder %s3526_s23, %s2309_s8  ;;  %p3667_p5 = scmp.ne.s32.totalorder %s3585_s27, 0 }
  0x7c   : > { %v453_v55 = vrot.slane %v439_v49, %v2628_v5  ;;  %s2387_s0 = smov [#allocation10]  }
  0x7d   : > { %v511_v21 = vrot.slane %v495_v13, %v2628_v5  ;;  %v462_v22 = vrot.slane %v446_v15, %v2628_v5  ;;  %v503_v23 = vcombine.high %v495_v13, %v495_v13  ;;  %v454_v24 = vcombine.high %v446_v15, %v446_v15  ;;  %p2311_p6 = pnand %p2310_p12, %p3667_p5  ;;  %s2313_s11 = sshll.u32 %s2387_s0, 4  ;;  %s2314_s11 = int_to_ptr.vmem [resolvable:$false] %s2313_s11 }
  0x7e   : > { %v2656_v26 = vrot.slane %v544_v20, %v2628_v5  ;;  %v552_v28 = vcombine.high %v544_v20, %v544_v20  ;;  %v2684_v53 = vrot.slane %v502_v43, %v2628_v5  ;;  %v2690_v60 = vrot.slane %v453_v55, %v2628_v5  ;;  %s2315_s6 = scalar_lea.vmem %s2314_s11, 256  ;;  %p2316_p13 = scmp.lt.s32.totalorder %s3526_s23, %s2314_s11 }
  0x7f   : > { %v670_v30 = vrot.slane %v511_v21, %v2646_v14  ;;  %v638_v31 = vrot.slane %v462_v22, %v2646_v14  ;;  %v525_v32 = vrot.slane %v503_v23, %v2628_v5  ;;  %v533_v33 = vcombine.high %v511_v21, %v511_v21  ;;  %p2312_p10 = pneg %p2311_p6  ;;  %p2317_p3 = scmp.lt.s32.totalorder %s2315_s6, %s2309_s8 }
  0x80   : > { %v702_v34 = vrot.slane %v2656_v26, %v2646_v14  ;;  %v476_v35 = vrot.slane %v454_v24, %v2628_v5  ;;  %v2673_v41 = vrot.slane %v552_v28, %v2628_v5  ;;  %v484_v42 = vcombine.high %v462_v22, %v462_v22 }
  0x81   : > { %v803_v36 = vmul.f32 %v1951_v17, %v670_v30  ;;  %v795_v37 = vmul.f32 %v1935_v18, %v638_v31  ;;  %v674_v38 = vrot.slane %v525_v32, %v2646_v14  ;;  %v678_v40 = vrot.slane %v533_v33, %v2646_v14  ;;  %p2318_p8 = por %p2317_p3, %p2316_p13 }
  0x82   : > { %v811_v45 = vmul.f32 %v1967_v25, %v702_v34  ;;  %v642_v47 = vrot.slane %v476_v35, %v2646_v14  ;;  %v706_v51 = vrot.slane %v2673_v41, %v2646_v14  ;;  %v646_v59 = vrot.slane %v484_v42, %v2646_v14 }
  0x83   : > { %843 = vadd.xlane.f32.xlu1 %v803_v36  ;;  %827 = vadd.xlane.f32.xlu0 %v795_v37  ;;  %v804_v44 = vmul.f32 %v1952_v19, %v674_v38  ;;  %v805_v56 = vmul.f32 %v1955_v39, %v678_v40  ;;  %v686_v1 = vrot.slane %v2684_v53, %v2646_v14  ;;  %v2697_v13 = vunpack.c.h.bf16 %v2638_v11  ;;  %v2007_v19 = vld [vmem:[%s2632_s16 + $0x48] sm:$0xff]   ;;  %v2010_v40 = vld [vmem:[%s2632_s16 + $0x60] sm:$0xff]   ;;  %p2319_p9 = pnand %p2318_p8, %p2312_p10 }
  0x84   : > { %v796_v57 = vmul.f32 %v1936_v46, %v642_v47  ;;  %v812_v63 = vmul.f32 %v1968_v50, %v706_v51  ;;  %v535_v2 = vcombine.high %v525_v32, %v525_v32  ;;  %v455_v4 = vcombine.high %v453_v55, %v453_v55  ;;  %v2001_v47 = vld [vmem:[%s2632_s16 + $0x18] sm:$0xff]  }
  0x85   : > { %v797_v6 = vmul.f32 %v1939_v58, %v646_v59  ;;  %v654_v8 = vrot.slane %v2690_v60, %v2646_v14  ;;  %v486_v10 = vcombine.high %v476_v35, %v476_v35  ;;  %v1956_v15 = vunpack.c.h.bf16 %v2659_v27 }
  0x86   : > { %v582_v16 = vcombine.high %v2656_v26, %v2656_v26  ;;  %v807_v17 = vmul.f32 %v1959_v61, %v686_v1  ;;  %v682_v18 = vrot.slane %v535_v2, %v2646_v14  ;;  %v2705_v20 = vrot.slane %v455_v4, %v2628_v5  ;;  %v2008_v1 = vld [vmem:[%s2632_s16 + $0x50] sm:$0xff]  }
  0x87   : > { %845 = vadd.xlane.f32.xlu1 %v804_v44  ;;  %859 = vadd.xlane.f32.xlu0 %v811_v45  ;;  %v504_v21 = vcombine.high %v502_v43, %v502_v43  ;;  %v799_v22 = vmul.f32 %v1943_v62, %v654_v8  ;;  %v1940_v23 = vunpack.c.h.bf16 %v1999_v48  ;;  %v650_v11 = vrot.slane %v486_v10, %v2646_v14 }
  0x88   : > { %v593_v24 = vrot.slane %v2697_v13, %v2628_v5  ;;  %v1971_v25 = vunpack.c.l.bf16 %v2007_v19  ;;  %v1944_v27 = vunpack.c.h.bf16 %v2000_v54  ;;  %v710_v26 = vrot.slane %v582_v16, %v2646_v14  ;;  %v2005_v54 = vld [vmem:[%s2632_s16 + $0x38] sm:$0xff]  }
  0x89   : > { %v658_v28 = vrot.slane %v2705_v20, %v2646_v14  ;;  %v532_v29 = vrot.slane %v504_v21, %v2628_v5  ;;  %v584_v30 = vcombine.high %v2673_v41, %v2673_v41  ;;  %v806_v31 = vmul.f32 %v1956_v15, %v682_v18 }
  0x8a   : > { %v798_v32 = vmul.f32 %v1940_v23, %v650_v11  ;;  %v601_v33 = vcombine.high %v593_v24, %v593_v24  ;;  %v1960_v34 = vunpack.c.h.bf16 %v2004_v52  ;;  %v1972_v35 = vunpack.c.h.bf16 %v2007_v19 }
  0x8b   : > { %847 = vadd.xlane.f32.xlu1 %v805_v56  ;;  %829 = vadd.xlane.f32.xlu0 %v796_v57  ;;  %v813_v36 = vmul.f32 %v1971_v25, %v710_v26  ;;  %v800_v37 = vmul.f32 %v1944_v27, %v658_v28  ;;  %v690_v38 = vrot.slane %v532_v29, %v2646_v14  ;;  %v1983_v44 = vunpack.c.l.bf16 %v2010_v40 }
  0x8c   : > { %v714_v39 = vrot.slane %v584_v30, %v2646_v14  ;;  %v609_v41 = vrot.slane %v593_v24, %v2628_v5  ;;  %v623_v42 = vrot.slane %v601_v33, %v2628_v5  ;;  %v537_v43 = vcombine.high %v2641_v12, %v2641_v12 }
  0x8d   : > { %v808_v45 = vmul.f32 %v1960_v34, %v690_v38  ;;  %v485_v48 = vcombine.high %v2690_v60, %v2690_v60  ;;  %v534_v49 = vcombine.high %v2684_v53, %v2684_v53  ;;  %v1984_v51 = vunpack.c.h.bf16 %v2010_v40  ;;  %v2011_v60 = vld [vmem:[%s2632_s16 + $0x68] sm:$0xff]   ;;  %v2012_v38 = vld [vmem:[%s2632_s16 + $0x70] sm:$0xff]  }
  0x8e   : > { %v814_v46 = vmul.f32 %v1972_v35, %v714_v39  ;;  %v734_v50 = vrot.slane %v609_v41, %v2646_v14  ;;  %v738_v52 = vrot.slane %v623_v42, %v2646_v14  ;;  %v551_v55 = vrot.slane %v537_v43, %v2628_v5 }
  0x8f   : > { %861 = vadd.xlane.f32.xlu1 %v812_v63  ;;  %831 = vadd.xlane.f32.xlu0 %v797_v6  ;;  %v1947_v56 = vunpack.c.l.bf16 %v2001_v47  ;;  %v662_v57 = vrot.slane %v485_v48, %v2646_v14  ;;  %v1963_v58 = vunpack.c.l.bf16 %v2005_v54  ;;  %v694_v59 = vrot.slane %v534_v49, %v2646_v14 }
  0x90   : > { %v631_v61 = vcombine.high %v609_v41, %v609_v41  ;;  %v819_v53 = vmul.f32 %v1983_v44, %v734_v50  ;;  %v820_v62 = vmul.f32 %v1984_v51, %v738_v52  ;;  %v567_v63 = vrot.slane %v551_v55, %v2628_v5 }
  0x91   : > { %v1987_v2 = vunpack.c.l.bf16 %v2011_v60  ;;  %v536_v4 = vcombine.high %v532_v29, %v532_v29  ;;  %v801_v6 = vmul.f32 %v1947_v56, %v662_v57  ;;  %v809_v8 = vmul.f32 %v1963_v58, %v694_v59 }
  0x92   : > { %v742_v10 = vrot.slane %v631_v61, %v2646_v14  ;;  %v487_v15 = vcombine.high %v2705_v20, %v2705_v20  ;;  %v1975_v16 = vunpack.c.l.bf16 %v2008_v1  ;;  %v553_v18 = vcombine.high %v551_v55, %v551_v55  ;;  %v2013_v55 = vld [vmem:[%s2632_s16 + $0x78] sm:$0xff]  }
  0x93   : > { %851 = vadd.xlane.f32.xlu1 %v807_v17  ;;  %835 = vadd.xlane.f32.xlu0 %v799_v22  ;;  %v718_v17 = vrot.slane %v567_v63, %v2646_v14  ;;  %v586_v19 = vcombine.high %v2697_v13, %v2697_v13  ;;  %v1964_v21 = vunpack.c.h.bf16 %v2005_v54  ;;  %v698_v22 = vrot.slane %v536_v4, %v2646_v14 }
  0x94   : > { %v821_v23 = vmul.f32 %v1987_v2, %v742_v10  ;;  %v1948_v11 = vunpack.c.h.bf16 %v2001_v47  ;;  %v666_v24 = vrot.slane %v487_v15, %v2646_v14  ;;  %v633_v25 = vcombine.high %v623_v42, %v623_v42 }
  0x95   : > { %v815_v20 = vmul.f32 %v1975_v16, %v718_v17  ;;  %v581_v27 = vrot.slane %v553_v18, %v2628_v5  ;;  %v600_v26 = vrot.slane %v586_v19, %v2628_v5  ;;  %v1988_v28 = vunpack.c.h.bf16 %v2011_v60 }
  0x96   : > { %v810_v29 = vmul.f32 %v1964_v21, %v698_v22  ;;  %v802_v30 = vmul.f32 %v1948_v11, %v666_v24  ;;  %v1976_v33 = vunpack.c.h.bf16 %v2008_v1  ;;  %v1991_v44 = vunpack.c.l.bf16 %v2012_v38 }
  0x97   : > { %849 = vadd.xlane.f32.xlu1 %v806_v31  ;;  %833 = vadd.xlane.f32.xlu0 %v798_v32  ;;  %v746_v31 = vrot.slane %v633_v25, %v2646_v14  ;;  %v583_v32 = vcombine.high %v567_v63, %v567_v63  ;;  %v722_v34 = vrot.slane %v581_v27, %v2646_v14  ;;  %v1992_v52 = vunpack.c.h.bf16 %v2012_v38  ;;  %v1926_v63 = vld [vmem:[%s2617_s7] sm:$0xff]  }
  0x98   : > { %v616_v35 = vrot.slane %v600_v26, %v2628_v5  ;;  %v585_v42 = vcombine.high %v581_v27, %v581_v27  ;;  %v1996_v58 = vunpack.c.h.bf16 %v2013_v55  ;;  %v1995_v60 = vunpack.c.l.bf16 %v2013_v55 }
  0x99   : > { %v822_v39 = vmul.f32 %v1988_v28, %v746_v31  ;;  %v726_v41 = vrot.slane %v583_v32, %v2646_v14  ;;  %v816_v43 = vmul.f32 %v1976_v33, %v722_v34  ;;  %v1927_v1 = vunpack.c.l.bf16 %v1926_v63 }
  0x9a   : > { %v730_v49 = vrot.slane %v585_v42, %v2646_v14  ;;  %v632_v50 = vcombine.high %v616_v35, %v616_v35  ;;  %v1928_v4 = vunpack.c.h.bf16 %v1926_v63 }
  0x9b   : > { %863 = vadd.xlane.f32.xlu0 %v813_v36  ;;  %837 = vadd.xlane.f32.xlu1 %v800_v37  ;;  %v2009_v36 = vld [vmem:[%s2632_s16 + $0x58] sm:$0xff]   ;;  %v602_v37 = vcombine.high %v600_v26, %v600_v26  ;;  %v351_v2 = vmul.f32 %v1927_v1, %v2635_v9 }
  0x9c   : > { %v1979_v40 = vunpack.c.l.bf16 %v2009_v36  ;;  %v1980_v48 = vunpack.c.h.bf16 %v2009_v36  ;;  %v758_v61 = vrot.slane %v632_v50, %v2646_v14 }
  0x9e   : > { %v817_v47 = vmul.f32 %v1979_v40, %v726_v41  ;;  %v818_v57 = vmul.f32 %v1980_v48, %v730_v49 }
  0x9f   : > { %853 = vadd.xlane.f32.xlu0 %v808_v45  ;;  %865 = vadd.xlane.f32.xlu1 %v814_v46  ;;  %v750_v45 = vrot.slane %v616_v35, %v2646_v14  ;;  %v630_v46 = vrot.slane %v602_v37, %v2628_v5 }
  0xa1   : > { %v823_v51 = vmul.f32 %v1991_v44, %v750_v45  ;;  %v754_v54 = vrot.slane %v630_v46, %v2646_v14  ;;  %v634_v56 = vcombine.high %v630_v46, %v630_v46 }
  0xa3   : > { %875 = vadd.xlane.f32.xlu0 %v819_v53  ;;  %877 = vadd.xlane.f32.xlu1 %v820_v62  ;;  %v824_v5 = vmul.f32 %v1992_v52, %v754_v54  ;;  %v762_v59 = vrot.slane %v634_v56, %v2646_v14  ;;  %v825_v62 = vmul.f32 %v1995_v60, %v758_v61 }
  0xa5   : > { %v826_v53 = vmul.f32 %v1996_v58, %v762_v59 }
  0xa7   : > { %839 = vadd.xlane.f32.xlu0 %v801_v6  ;;  %855 = vadd.xlane.f32.xlu1 %v809_v8  ;;  %v1998_v6 = vld [vmem:[%s2617_s7 + $0x8] sm:$0xff]   ;;  %v352_v8 = vmul.f32 %v1928_v4, %v2630_v7 }
  0xa8   : > { %v1931_v10 = vunpack.c.l.bf16 %v1998_v6  ;;  %v1932_v14 = vunpack.c.h.bf16 %v1998_v6 }
  0xaa   : > { %v353_v15 = vmul.f32 %v1931_v10, %v2641_v12  ;;  %v354_v16 = vmul.f32 %v1932_v14, %v2697_v13 }
  0xab   : > { %867 = vadd.xlane.f32.xlu0 %v815_v20  ;;  %879 = vadd.xlane.f32.xlu1 %v821_v23 }
  0xaf   : > { %857 = vadd.xlane.f32.xlu1 %v810_v29  ;;  %841 = vadd.xlane.f32.xlu0 %v802_v30 }
  0xb3   : > { %881 = vadd.xlane.f32.xlu1 %v822_v39  ;;  %869 = vadd.xlane.f32.xlu0 %v816_v43 }
  0xb7   : > { %883 = vadd.xlane.f32.xlu1 %v823_v51  ;;  %871 = vadd.xlane.f32.xlu0 %v817_v47 }
  0xbb   : > { %885 = vadd.xlane.f32.xlu1 %v824_v5  ;;  %873 = vadd.xlane.f32.xlu0 %v818_v57 }
  0xbf   : > { %889 = vadd.xlane.f32.xlu1 %v826_v53  ;;  %887 = vadd.xlane.f32.xlu0 %v825_v62 }
  0xc3   : > { %355 = vadd.xlane.f32.xlu0 %v351_v2  ;;  %357 = vadd.xlane.f32.xlu1 %v352_v8 }
  0xc7   : > { %359 = vadd.xlane.f32.xlu0 %v353_v15  ;;  %361 = vadd.xlane.f32.xlu1 %v354_v16  ;;  %v1500_v16 = vand.u32 127, %v443_v0 }
 0x110   : > { %v844_v17 = vpop.xlane.xlu1 %843  ;;  %v828_v18 = vpop.xlane.xlu0 %827 }
 0x111   : > { %v1885_v19 = vclamps-f32 %v844_v17, 10.0  ;;  %v1877_v21 = vclamps-f32 %v828_v18, 10.0 }
 0x113   : > { %v2766_v22 = vsub.f32 0.0, %v1885_v19  ;;  %v2768_v9 = vsub.f32 0.0, %v1877_v21 }
 0x114   : > { %v846_v23 = vpop.xlane.xlu1 %845  ;;  %v860_v11 = vpop.xlane.xlu0 %859 }
 0x115   : > { %v1027_v7 = vand.u32 2147483647, %v2766_v22  ;;  %v1886_v24 = vclamps-f32 %v846_v23, 10.0  ;;  %v1893_v25 = vclamps-f32 %v860_v11, 10.0  ;;  %v1019_v12 = vand.u32 2147483647, %v2768_v9 }
 0x116   : > { %v995_v0 = vmin.f32 %v2766_v22, 0.0 }
 0x117   : > { %v2772_v20 = vsub.f32 0.0, %v1886_v24  ;;  %v1059_v26 = vsub.f32 0.0, %v1027_v7  ;;  %v2774_v30 = vsub.f32 0.0, %v1893_v25  ;;  %v1051_v31 = vsub.f32 0.0, %v1019_v12 }
 0x118   : > { %v848_v13 = vpop.xlane.xlu1 %847  ;;  %v830_v27 = vpop.xlane.xlu0 %829  ;;  %v2812_v24 = vsub.s32 %v1500_v16, %v2625_v3 }
 0x119   : > { %v1887_v28 = vclamps-f32 %v848_v13, 10.0  ;;  %v1878_v29 = vclamps-f32 %v830_v27, 10.0  ;;  %v1028_v32 = vand.u32 2147483647, %v2772_v20  ;;  %v1099_v35 = vmul.f32 1.442695, %v1059_v26 }
 0x11a   : > { %v1035_v37 = vand.u32 2147483647, %v2774_v30  ;;  %v1083_v38 = vmul.f32 1.442695, %v1051_v31  ;;  %v987_v27 = vmin.f32 %v2768_v9, 0.0  ;;  %v996_v26 = vmin.f32 %v2772_v20, 0.0 }
 0x11b   : > { %v2777_v33 = vsub.f32 0.0, %v1887_v28  ;;  %v2779_v36 = vsub.f32 0.0, %v1878_v29  ;;  %v1060_v39 = vsub.f32 0.0, %v1028_v32  ;;  %2075 = vpow2.f32 %v1099_v35 }
 0x11c   : > { %v862_v34 = vpop.xlane.xlu1 %861  ;;  %v832_v42 = vpop.xlane.xlu0 %831  ;;  %v1067_v44 = vsub.f32 0.0, %v1035_v37  ;;  %2077 = vpow2.f32 %v1083_v38  ;;  %v1003_v28 = vmin.f32 %v2774_v30, 0.0 }
 0x11d   : > { %v1894_v40 = vclamps-f32 %v862_v34, 10.0  ;;  %v1029_v41 = vand.u32 2147483647, %v2777_v33  ;;  %v1020_v43 = vand.u32 2147483647, %v2779_v36  ;;  %v1879_v47 = vclamps-f32 %v832_v42, 10.0 }
 0x11e   : > { %v1101_v45 = vmul.f32 1.442695, %v1060_v39  ;;  %v1115_v51 = vmul.f32 1.442695, %v1067_v44  ;;  %v988_v42 = vmin.f32 %v2779_v36, 0.0 }
 0x11f   : > { %v2784_v46 = vsub.f32 0.0, %v1894_v40  ;;  %v1061_v48 = vsub.f32 0.0, %v1029_v41  ;;  %v1052_v49 = vsub.f32 0.0, %v1020_v43  ;;  %v2787_v54 = vsub.f32 0.0, %v1879_v47 }
 0x120   : > { %v852_v50 = vpop.xlane.xlu1 %851  ;;  %2079 = vpow2.f32 %v1101_v45  ;;  %v836_v57 = vpop.xlane.xlu0 %835  ;;  %v997_v40 = vmin.f32 %v2777_v33, 0.0 }
 0x121   : > { %v1036_v52 = vand.u32 2147483647, %v2784_v46  ;;  %v1103_v55 = vmul.f32 1.442695, %v1061_v48  ;;  %v1889_v56 = vclamps-f32 %v852_v50, 10.0  ;;  %2081 = vpow2.f32 %v1115_v51 }
 0x122   : > { %v1085_v58 = vmul.f32 1.442695, %v1052_v49  ;;  %v1021_v60 = vand.u32 2147483647, %v2787_v54  ;;  %v1881_v61 = vclamps-f32 %v836_v57, 10.0  ;;  %v1004_v44 = vmin.f32 %v2784_v46, 0.0 }
 0x123   : > { %v1068_v59 = vsub.f32 0.0, %v1036_v52  ;;  %2083 = vpow2.f32 %v1103_v55  ;;  %v2792_v62 = vsub.f32 0.0, %v1889_v56  ;;  %v989_v45 = vmin.f32 %v2787_v54, 0.0 }
 0x124   : > { %v850_v53 = vpop.xlane.xlu1 %849  ;;  %2085 = vpow2.f32 %v1085_v58  ;;  %v1053_v6 = vsub.f32 0.0, %v1021_v60  ;;  %v2797_v8 = vsub.f32 0.0, %v1881_v61  ;;  %v834_v25 = vpop.xlane.xlu0 %833 }
 0x125   : > { %v2789_v5 = vpop.eup %2075  ;;  %v1888_v2 = vclamps-f32 %v850_v53, 10.0  ;;  %v1117_v4 = vmul.f32 1.442695, %v1068_v59  ;;  %v1031_v15 = vand.u32 2147483647, %v2792_v62  ;;  %v999_v47 = vmin.f32 %v2792_v62, 0.0 }
 0x126   : > { %v2794_v63 = vpop.eup %2077  ;;  %v1219_v1 = vadd.f32 1.0, %v2789_v5  ;;  %v1087_v18 = vmul.f32 1.442695, %v1053_v6  ;;  %v1023_v19 = vand.u32 2147483647, %v2797_v8  ;;  %v1222_v13 = vmul.f32 -0.5, %v2789_v5 }
 0x127   : > { %v1147_v10 = vadd.f32 1.0, %v2794_v63  ;;  %v2804_v17 = vsub.f32 0.0, %v1888_v2  ;;  %v1063_v11 = vsub.f32 0.0, %v1031_v15  ;;  %v1225_v31 = vand.u32 2147483647, %v2789_v5 }
 0x128   : > { %2087 = vlog2.f32 %v1219_v1  ;;  %v1055_v34 = vsub.f32 0.0, %v1023_v19  ;;  %v1150_v35 = vmul.f32 -0.5, %v2794_v63  ;;  %v1153_v39 = vand.u32 2147483647, %v2794_v63  ;;  %v864_v51 = vpop.xlane.xlu0 %863 }
 0x129   : > { %2089 = vpow2.f32 %v1117_v4  ;;  %v1030_v7 = vand.u32 2147483647, %v2804_v17  ;;  %v1107_v37 = vmul.f32 1.442695, %v1063_v11  ;;  %v1223_v48 = vadd.f32 1.0, %v1222_v13 }
 0x12a   : > { %v2801_v14 = vpop.eup %2079  ;;  %2091 = vlog2.f32 %v1147_v10  ;;  %v1091_v49 = vmul.f32 1.442695, %v1055_v34  ;;  %v1880_v50 = vclamps-f32 %v834_v25, 10.0  ;;  %vm2834_vm0 = vcmp.lt.f32.partialorder %v1225_v31, 0.0004427343  ;;  %v838_v31 = vpop.xlane.xlu1 %837 }
 0x12b   : > { %v2807_v21 = vpop.eup %2081  ;;  %v1228_v23 = vadd.f32 1.0, %v2801_v14  ;;  %2093 = vpow2.f32 %v1087_v18  ;;  %v1062_v38 = vsub.f32 0.0, %v1030_v7  ;;  %v1151_v56 = vadd.f32 1.0, %v1150_v35 }
 0x12c   : > { %v1291_v32 = vadd.f32 1.0, %v2807_v21  ;;  %vm2840_vm1 = vcmp.lt.f32.partialorder %v1153_v39, 0.0004427343  ;;  %v1231_v60 = vmul.f32 -0.5, %v2801_v14  ;;  %v1234_v61 = vand.u32 2147483647, %v2801_v14 }
 0x12d   : > { %v2815_v12 = vpop.eup %2083  ;;  %2095 = vlog2.f32 %v1228_v23  ;;  %v1105_v57 = vmul.f32 1.442695, %v1062_v38  ;;  %v1294_v1 = vmul.f32 -0.5, %v2807_v21  ;;  %v991_v4 = vmin.f32 %v2797_v8, 0.0 }
 0x12e   : > { %v2821_v29 = vpop.eup %2085  ;;  %v1237_v41 = vadd.f32 1.0, %v2815_v12  ;;  %2097 = vlog2.f32 %v1291_v32  ;;  %v1240_v2 = vmul.f32 -0.5, %v2815_v12  ;;  %v2850_v15 = vsub.f32 0.0, %v1880_v50  ;;  %v854_v32 = vpop.xlane.xlu0 %853 }
 0x12f   : > { %v1156_v43 = vadd.f32 1.0, %v2821_v29  ;;  %2099 = vpow2.f32 %v1107_v37  ;;  %v1159_v10 = vmul.f32 -0.5, %v2821_v29  ;;  %v1224_v16 = vmul.f32 %v2789_v5, %v1223_v48 }
 0x130   : > { %2101 = vlog2.f32 %v1237_v41  ;;  %v1297_v18 = vand.u32 2147483647, %v2807_v21  ;;  %v1152_v7 = vmul.f32 %v2794_v63, %v1151_v56  ;;  %v1232_v25 = vadd.f32 1.0, %v1231_v60 }
 0x131   : > { %2103 = vlog2.f32 %v1156_v43  ;;  %vm2858_vm2 = vcmp.lt.f32.partialorder %v1234_v61, 0.0004427343  ;;  %v1295_v35 = vadd.f32 1.0, %v1294_v1  ;;  %v1241_v5 = vadd.f32 1.0, %v1240_v2 }
 0x132   : > { %v2088_v52 = vpop.eup %2087  ;;  %2105 = vpow2.f32 %v1091_v49  ;;  %v1243_v37 = vand.u32 2147483647, %v2815_v12  ;;  %v1162_v38 = vand.u32 2147483647, %v2821_v29  ;;  %v1160_v41 = vadd.f32 1.0, %v1159_v10 }
 0x133   : > { %v2838_v58 = vpop.eup %2089  ;;  %v1221_v6 = vmul.f32 0.6931472, %v2088_v52  ;;  %2107 = vpow2.f32 %v1105_v57  ;;  %v1022_v63 = vand.u32 2147483647, %v2850_v15  ;;  %v1895_v43 = vclamps-f32 %v864_v51, 10.0 }
 0x134   : > { %v2092_v53 = vpop.eup %2091  ;;  %v1300_v19 = vadd.f32 1.0, %v2838_v58  ;;  %vm2867_vm3 = vcmp.lt.f32.partialorder %v1297_v18, 0.0004427343  ;;  %v1882_v50 = vclamps-f32 %v838_v31, 10.0  ;;  %v1890_v52 = vclamps-f32 %v854_v32, 10.0  ;;  %v866_v18 = vpop.xlane.xlu1 %865 }
 0x135   : > { %v2855_v23 = vpop.eup %2093  ;;  %v1149_v11 = vmul.f32 0.6931472, %v2092_v53  ;;  %v1227_v39 = vsel %vm2834_vm0, %v1224_v16, %v1221_v6  ;;  %v1233_v55 = vmul.f32 %v2801_v14, %v1232_v25  ;;  %v2875_v61 = vsub.f32 0.0, %v1895_v43 }
 0x136   : > { %2109 = vlog2.f32 %v1300_v19  ;;  %v1165_v49 = vadd.f32 1.0, %v2855_v23  ;;  %v2881_v51 = vsub.f32 %v995_v0, %v1227_v39  ;;  %v1296_v1 = vmul.f32 %v2807_v21, %v1295_v35 }
 0x137   : > { %v2096_v34 = vpop.eup %2095  ;;  %v1155_v57 = vsel %vm2840_vm1, %v1152_v7, %v1149_v11  ;;  %v1303_v2 = vmul.f32 -0.5, %v2838_v58  ;;  %v1054_v6 = vsub.f32 0.0, %v1022_v63  ;;  %v2886_v59 = vmul.f32 %v2815_v12, %v1241_v5  ;;  %v876_v63 = vpop.xlane.xlu0 %875 }
 0x138   : > { %v2098_v56 = vpop.eup %2097  ;;  %v1230_v60 = vmul.f32 0.6931472, %v2096_v34  ;;  %vm2888_vm4 = vcmp.lt.f32.partialorder %v1243_v37, 0.0004427343  ;;  %v2893_v14 = vmul.f32 %v2821_v29, %v1160_v41  ;;  %v998_v22 = vmin.f32 %v2804_v17, 0.0 }
 0x139   : > { %v2877_v53 = vpop.eup %2099  ;;  %v2896_v0 = vsub.f32 0.0, %v1882_v50  ;;  %v2900_v19 = vsub.f32 %v987_v27, %v1155_v57  ;;  %vm2902_vm5 = vcmp.lt.f32.partialorder %v1162_v38, 0.0004427343  ;;  %v1306_v11 = vand.u32 2147483647, %v2838_v58 }
 0x13a   : > { %v2102_v10 = vpop.eup %2101  ;;  %2111 = vlog2.f32 %v1165_v49  ;;  %v2907_v7 = vsub.f32 0.0, %v1890_v52  ;;  %v1236_v25 = vsel %vm2858_vm2, %v1233_v55, %v1230_v60  ;;  %v1293_v31 = vmul.f32 0.6931472, %v2098_v56 }
 0x13b   : > { %v2104_v21 = vpop.eup %2103  ;;  %v1255_v32 = vadd.f32 1.0, %v2877_v53  ;;  %v1037_v9 = vand.u32 2147483647, %v2875_v61  ;;  %v1536_v34 = vrot.slane %v2881_v51, %v2812_v24  ;;  %v1304_v35 = vadd.f32 1.0, %v1303_v2 }
 0x13c   : > { %v2909_v29 = vpop.eup %2105  ;;  %v1089_v5 = vmul.f32 1.442695, %v1054_v6  ;;  %v1896_v37 = vclamps-f32 %v866_v18, 10.0  ;;  %v1168_v38 = vmul.f32 -0.5, %v2855_v23  ;;  %v1171_v39 = vand.u32 2147483647, %v2855_v23 }
 0x13d   : > { %v2915_v27 = vpop.eup %2107  ;;  %v1069_v13 = vsub.f32 0.0, %v1037_v9  ;;  %v1024_v41 = vand.u32 2147483647, %v2896_v0  ;;  %v1444_v43 = vsub.f32 %v996_v26, %v1236_v25  ;;  %v1239_v49 = vmul.f32 0.6931472, %v2102_v10 }
 0x13e   : > { %vm2924_vm7 = vcmp.lt.f32.partialorder %v1306_v11, 0.0004427343  ;;  %v1183_v52 = vadd.f32 1.0, %v2909_v29  ;;  %v1032_v56 = vand.u32 2147483647, %v2907_v7  ;;  %v1299_v57 = vsel %vm2867_vm3, %v1296_v1, %v1293_v31  ;;  %v878_v31 = vpop.xlane.xlu1 %877 }
 0x13f   : > { %v1158_v60 = vmul.f32 0.6931472, %v2104_v21  ;;  %2113 = vlog2.f32 %v1255_v32  ;;  %v1246_v55 = vadd.f32 1.0, %v2915_v27  ;;  %v1119_v20 = vmul.f32 1.442695, %v1069_v13 }
 0x140   : > { %v2110_v51 = vpop.eup %2109  ;;  %2115 = vpow2.f32 %v1089_v5  ;;  %v2933_v26 = vsub.f32 0.0, %v1896_v37  ;;  %v1901_v2 = vclamps-f32 %v876_v63, 10.0  ;;  %v1504_v6 = vrot.slane %v2900_v19, %v2812_v24 }
 0x141   : > { %v1305_v10 = vmul.f32 %v2838_v58, %v1304_v35  ;;  %v1169_v18 = vadd.f32 1.0, %v1168_v38  ;;  %v1056_v11 = vsub.f32 0.0, %v1024_v41  ;;  %v2940_v48 = vsub.f32 %v1003_v28, %v1299_v57 }
 0x142   : > { %v1245_v1 = vsel %vm2888_vm4, %v2886_v59, %v1239_v49  ;;  %vm2945_vm9 = vcmp.lt.f32.partialorder %v1171_v39, 0.0004427343  ;;  %2117 = vlog2.f32 %v1183_v52  ;;  %v1064_v25 = vsub.f32 0.0, %v1032_v56 }
 0x143   : > { %v1164_v58 = vsel %vm2902_vm5, %v2893_v14, %v1158_v60  ;;  %v1302_v32 = vmul.f32 0.6931472, %v2110_v51  ;;  %v1258_v30 = vmul.f32 -0.5, %v2877_v53  ;;  %2119 = vlog2.f32 %v1246_v55  ;;  %v840_v14 = vpop.xlane.xlu0 %839 }
 0x144   : > { %v2112_v28 = vpop.eup %2111  ;;  %v1540_v9 = vrot.slane %v1444_v43, %v2812_v24  ;;  %2121 = vpow2.f32 %v1119_v20  ;;  %v1038_v59 = vand.u32 2147483647, %v2933_v26  ;;  %v2955_v16 = vsub.f32 0.0, %v1901_v2 }
 0x145   : > { %v1445_v35 = vsub.f32 %v997_v40, %v1245_v1  ;;  %v1261_v5 = vand.u32 2147483647, %v2877_v53  ;;  %v1093_v37 = vmul.f32 1.442695, %v1056_v11  ;;  %v1902_v12 = vclamps-f32 %v878_v31, 10.0  ;;  %v856_v11 = vpop.xlane.xlu1 %855 }
 0x146   : > { %v1436_v38 = vsub.f32 %v988_v42, %v1164_v58  ;;  %v1170_v39 = vmul.f32 %v2855_v23, %v1169_v18  ;;  %v1186_v13 = vmul.f32 -0.5, %v2909_v29  ;;  %v1109_v41 = vmul.f32 1.442695, %v1064_v25 }
 0x147   : > { %v1568_v63 = vrot.slane %v2940_v48, %v2812_v24  ;;  %v1308_v33 = vsel %vm2924_vm7, %v1305_v10, %v1302_v32  ;;  %v1167_v40 = vmul.f32 0.6931472, %v2112_v28  ;;  %v1259_v43 = vadd.f32 1.0, %v1258_v30 }
 0x148   : > { %v1643_v49 = vsel %vm1629_vm6, %v1540_v9, %v1536_v34  ;;  %v1070_v52 = vsub.f32 0.0, %v1038_v59  ;;  %v1043_v56 = vand.u32 2147483647, %v2955_v16  ;;  %v1883_v36 = vclamps-f32 %v840_v14, 10.0 }
 0x149   : > { %v2114_v42 = vpop.eup %2113  ;;  %v1544_v23 = vrot.slane %v1445_v35, %v2812_v24  ;;  %vm2971_vm10 = vcmp.lt.f32.partialorder %v1261_v5, 0.0004427343  ;;  %2123 = vpow2.f32 %v1093_v37  ;;  %v2975_v60 = vsub.f32 0.0, %v1902_v12 }
 0x14a   : > { %v2977_v50 = vpop.eup %2115  ;;  %v1508_v55 = vrot.slane %v1436_v38, %v2812_v24  ;;  %v1452_v34 = vsub.f32 %v1004_v44, %v1308_v33  ;;  %v1187_v51 = vadd.f32 1.0, %v1186_v13  ;;  %2125 = vpow2.f32 %v1109_v41 }
 0x14b   : > { %v1173_v20 = vsel %vm2945_vm9, %v1170_v39, %v1167_v40  ;;  %v1260_v2 = vmul.f32 %v2877_v53, %v1259_v43  ;;  %v1189_v10 = vand.u32 2147483647, %v2909_v29  ;;  %v1249_v18 = vmul.f32 -0.5, %v2915_v27  ;;  %v868_v40 = vpop.xlane.xlu0 %867 }
 0x14c   : > { %v2118_v48 = vpop.eup %2117  ;;  %v1257_v1 = vmul.f32 0.6931472, %v2114_v42  ;;  %v1121_v25 = vmul.f32 1.442695, %v1070_v52  ;;  %v1075_v31 = vsub.f32 0.0, %v1043_v56  ;;  %v2987_v58 = vsub.f32 0.0, %v1883_v36 }
 0x14d   : > { %v2120_v46 = vpop.eup %2119  ;;  %v2990_v44 = vsel %vm1631_vm8, %v1544_v23, %v1643_v49  ;;  %v990_v21 = vmin.f32 %v2850_v15, 0.0  ;;  %v1174_v32 = vadd.f32 1.0, %v2977_v50  ;;  %v1044_v53 = vand.u32 2147483647, %v2975_v60 }
 0x14e   : > { %v2995_v30 = vpop.eup %2121  ;;  %v1630_v28 = vsel %vm1629_vm6, %v1508_v55, %v1504_v6  ;;  %v1572_v9 = vrot.slane %v1452_v34, %v2812_v24  ;;  %v1188_v59 = vmul.f32 %v2909_v29, %v1187_v51  ;;  %v1891_v35 = vclamps-f32 %v856_v11, 10.0 }
 0x14f   : > { %v1437_v5 = vsub.f32 %v989_v45, %v1173_v20  ;;  %v1185_v37 = vmul.f32 0.6931472, %v2118_v48  ;;  %v1250_v12 = vadd.f32 1.0, %v1249_v18  ;;  %v1252_v14 = vand.u32 2147483647, %v2915_v27 }
 0x150   : > { %v1263_v38 = vsel %vm2971_vm10, %v1260_v2, %v1257_v1  ;;  %2127 = vpow2.f32 %v1121_v25  ;;  %v1131_v39 = vmul.f32 1.442695, %v1075_v31  ;;  %v1025_v19 = vand.u32 2147483647, %v2987_v58  ;;  %v3046_v2 = vpop.xlane.xlu1 %879 }
 0x151   : > { %v1248_v6 = vmul.f32 0.6931472, %v2120_v46  ;;  %2129 = vlog2.f32 %v1174_v32  ;;  %v1309_v13 = vadd.f32 1.0, %v2995_v30  ;;  %v1076_v29 = vsub.f32 0.0, %v1044_v53 }
 0x152   : > { %v3011_v41 = vsel %vm1629_vm6, %v1572_v9, %v1568_v63  ;;  %vm3013_vm11 = vcmp.lt.f32.partialorder %v1189_v10, 0.0004427343  ;;  %v1005_v45 = vmin.f32 %v2875_v61, 0.0  ;;  %v3018_v33 = vsub.f32 0.0, %v1891_v35 }
 0x153   : > { %v3020_v43 = vpop.eup %2123  ;;  %v1512_v49 = vrot.slane %v1437_v5, %v2812_v24  ;;  %v3025_v52 = vsub.f32 %v999_v47, %v1263_v38  ;;  %v1191_v63 = vsel %vm3013_vm11, %v1188_v59, %v1185_v37  ;;  %v1251_v56 = vmul.f32 %v2915_v27, %v1250_v12 }
 0x154   : > { %v3030_v36 = vpop.eup %2125  ;;  %vm3032_vm12 = vcmp.lt.f32.partialorder %v1252_v14, 0.0004427343  ;;  %v992_v23 = vmin.f32 %v2896_v0, 0.0  ;;  %2131 = vpow2.f32 %v1131_v39  ;;  %v1057_v57 = vsub.f32 0.0, %v1025_v19  ;;  %v858_v38 = vpop.xlane.xlu1 %857 }
 0x155   : > { %v1254_v62 = vsel %vm3032_vm12, %v1251_v56, %v1248_v6  ;;  %2133 = vlog2.f32 %v1309_v13  ;;  %v1133_v47 = vmul.f32 1.442695, %v1076_v29  ;;  %v1897_v55 = vclamps-f32 %v868_v40, 10.0 }
 0x156   : > { %v3041_v34 = vsub.f32 %v991_v4, %v1191_v63  ;;  %v1177_v27 = vmul.f32 -0.5, %v2977_v50  ;;  %v1192_v51 = vadd.f32 1.0, %v3020_v43  ;;  %v1033_v20 = vand.u32 2147483647, %v3018_v33 }
 0x157   : > { %v3049_v10 = vsel %vm1631_vm8, %v1512_v49, %v1630_v28  ;;  %v1000_v11 = vmin.f32 %v2907_v7, 0.0  ;;  %v1264_v8 = vadd.f32 1.0, %v3030_v36  ;;  %v3057_v4 = vsub.f32 %v998_v22, %v1254_v62 }
 0x158   : > { %v1180_v48 = vand.u32 2147483647, %v2977_v50  ;;  %v1006_v1 = vmin.f32 %v2933_v26, 0.0  ;;  %v1095_v25 = vmul.f32 1.442695, %v1057_v57  ;;  %v1312_v31 = vmul.f32 -0.5, %v2995_v30 }
 0x159   : > { %v1011_v46 = vmin.f32 %v2955_v16, 0.0  ;;  %2135 = vpow2.f32 %v1133_v47  ;;  %v3063_v32 = vsub.f32 0.0, %v1897_v55  ;;  %v1178_v22 = vadd.f32 1.0, %v1177_v27  ;;  %v842_v55 = vpop.xlane.xlu0 %841 }
 0x15a   : > { %v3065_v53 = vpop.eup %2127  ;;  %2137 = vlog2.f32 %v1192_v51  ;;  %v1065_v28 = vsub.f32 0.0, %v1033_v20  ;;  %v1195_v59 = vmul.f32 -0.5, %v3020_v43  ;;  %v1267_v35 = vmul.f32 -0.5, %v3030_v36 }
 0x15b   : > { %v2130_v9 = vpop.eup %2129  ;;  %2139 = vlog2.f32 %v1264_v8  ;;  %v1012_v5 = vmin.f32 %v2975_v60, 0.0  ;;  %v1548_v37 = vrot.slane %v3057_v4, %v2812_v24  ;;  %vm3074_vm14 = vcmp.lt.f32.partialorder %v1180_v48, 0.0004427343 }
 0x15c   : > { %v993_v14 = vmin.f32 %v2987_v58, 0.0  ;;  %2141 = vpow2.f32 %v1095_v25  ;;  %v1313_v39 = vadd.f32 1.0, %v1312_v31  ;;  %v1315_v19 = vand.u32 2147483647, %v2995_v30 }
 0x15d   : > { %v1321_v6 = vmul.f32 -0.5, %v3065_v53  ;;  %v1039_v13 = vand.u32 2147483647, %v3063_v32  ;;  %v1176_v54 = vmul.f32 0.6931472, %v2130_v9  ;;  %v1179_v40 = vmul.f32 %v2977_v50, %v1178_v22 }
 0x15e   : > { %v3082_v29 = vpop.eup %2131  ;;  %v1198_v49 = vand.u32 2147483647, %v3020_v43  ;;  %v1111_v63 = vmul.f32 1.442695, %v1065_v28  ;;  %v1196_v42 = vadd.f32 1.0, %v1195_v59  ;;  %v1268_v57 = vadd.f32 1.0, %v1267_v35 }
 0x15f   : > { %v2134_v56 = vpop.eup %2133  ;;  %v1270_v62 = vand.u32 2147483647, %v3030_v36  ;;  %v1892_v47 = vclamps-f32 %v858_v38, 10.0  ;;  %v1318_v27 = vadd.f32 1.0, %v3065_v53  ;;  %v1001_v51 = vmin.f32 %v3018_v33, 0.0 }
 0x160   : > { %v1903_v8 = vclamps-f32 %v3046_v2, 10.0  ;;  %v1314_v50 = vmul.f32 %v2995_v30, %v1313_v39  ;;  %vm3092_vm15 = vcmp.lt.f32.partialorder %v1315_v19, 0.0004427343  ;;  %v1322_v48 = vadd.f32 1.0, %v1321_v6  ;;  %v882_v2 = vpop.xlane.xlu1 %881 }
 0x161   : > { %v1071_v25 = vsub.f32 0.0, %v1039_v13  ;;  %v1182_v31 = vsel %vm3074_vm14, %v1179_v40, %v1176_v54  ;;  %v1311_v22 = vmul.f32 0.6931472, %v2134_v56  ;;  %vm3098_vm0 = vcmp.lt.f32.partialorder %v1198_v49, 0.0004427343  ;;  %v870_v56 = vpop.xlane.xlu0 %869 }
 0x162   : > { %v1363_v9 = vadd.f32 1.0, %v3082_v29  ;;  %2143 = vpow2.f32 %v1111_v63  ;;  %v1197_v30 = vmul.f32 %v3020_v43, %v1196_v42  ;;  %v1269_v35 = vmul.f32 %v3030_v36, %v1268_v57 }
 0x163   : > { %v3103_v59 = vpop.eup %2135  ;;  %vm3107_vm1 = vcmp.lt.f32.partialorder %v1270_v62, 0.0004427343  ;;  %v1366_v12 = vmul.f32 -0.5, %v3082_v29  ;;  %v3112_v39 = vsub.f32 0.0, %v1892_v47  ;;  %2145 = vlog2.f32 %v1318_v27 }
 0x164   : > { %v2138_v19 = vpop.eup %2137  ;;  %v1324_v6 = vand.u32 2147483647, %v3065_v53  ;;  %v1884_v13 = vclamps-f32 %v842_v55, 10.0  ;;  %v3117_v54 = vsel %vm1633_vm13, %v1548_v37, %v2990_v44  ;;  %v3121_v36 = vsub.f32 %v990_v21, %v1182_v31 }
 0x165   : > { %v2140_v43 = vpop.eup %2139  ;;  %v3124_v40 = vmul.f32 %v3065_v53, %v1322_v48  ;;  %v1369_v49 = vand.u32 2147483647, %v3082_v29  ;;  %v1123_v63 = vmul.f32 1.442695, %v1071_v25  ;;  %v1317_v57 = vsel %vm3092_vm15, %v1314_v50, %v1311_v22  ;;  %v884_v25 = vpop.xlane.xlu1 %883 }
 0x166   : > { %v3127_v42 = vpop.eup %2141  ;;  %2147 = vlog2.f32 %v1363_v9  ;;  %v1034_v44 = vand.u32 2147483647, %v3112_v39  ;;  %v3132_v37 = vsub.f32 0.0, %v1884_v13  ;;  %v1194_v15 = vmul.f32 0.6931472, %v2138_v19  ;;  %v872_v61 = vpop.xlane.xlu0 %871 }
 0x167   : > { %v1367_v21 = vadd.f32 1.0, %v1366_v12  ;;  %v1372_v62 = vadd.f32 1.0, %v3103_v59  ;;  %v1375_v53 = vmul.f32 -0.5, %v3103_v59  ;;  %v1266_v47 = vmul.f32 0.6931472, %v2140_v43 }
 0x168   : > { %v3136_v55 = vsub.f32 0.0, %v1903_v8  ;;  %v1066_v27 = vsub.f32 0.0, %v1034_v44  ;;  %v1026_v48 = vand.u32 2147483647, %v3132_v37  ;;  %v1453_v50 = vsub.f32 %v1005_v45, %v1317_v57 }
 0x169   : > { %v1201_v4 = vadd.f32 1.0, %v3127_v42  ;;  %2149 = vpow2.f32 %v1123_v63  ;;  %v1898_v31 = vclamps-f32 %v870_v56, 10.0  ;;  %v1378_v22 = vand.u32 2147483647, %v3103_v59 }
 0x16a   : > { %v1113_v9 = vmul.f32 1.442695, %v1066_v27  ;;  %v1058_v12 = vsub.f32 0.0, %v1026_v48  ;;  %v1904_v19 = vclamps-f32 %v882_v2, 10.0  ;;  %v1200_v13 = vsel %vm3098_vm0, %v1197_v30, %v1194_v15 }
 0x16b   : > { %2151 = vlog2.f32 %v1372_v62  ;;  %v1204_v43 = vmul.f32 -0.5, %v3127_v42  ;;  %v1272_v63 = vsel %vm3107_vm1, %v1269_v35, %v1266_v47  ;;  %vm3152_vm2 = vcmp.lt.f32.partialorder %v1324_v6, 0.0004427343  ;;  %v886_v6 = vpop.xlane.xlu1 %885 }
 0x16c   : > { %v3148_v45 = vpop.eup %2143  ;;  %v1045_v2 = vand.u32 2147483647, %v3136_v55  ;;  %2153 = vpow2.f32 %v1113_v9  ;;  %v1097_v57 = vmul.f32 1.442695, %v1058_v12  ;;  %v1576_v28 = vrot.slane %v1453_v50, %v2812_v24 }
 0x16d   : > { %v1376_v30 = vadd.f32 1.0, %v1375_v53  ;;  %2155 = vlog2.f32 %v1201_v4  ;;  %v3158_v44 = vsub.f32 0.0, %v1898_v31  ;;  %v2146_v15 = vpop.eup %2145  ;;  %v3160_v62 = vsub.f32 0.0, %v1904_v19 }
 0x16e   : > { %2157 = vpow2.f32 %v1097_v57  ;;  %v1905_v38 = vclamps-f32 %v884_v25, 10.0  ;;  %v1899_v35 = vclamps-f32 %v872_v61, 10.0  ;;  %v3164_v47 = vsub.f32 %v992_v23, %v1200_v13 }
 0x16f   : > { %v3168_v27 = vsub.f32 %v1000_v11, %v1272_v63  ;;  %v1273_v53 = vadd.f32 1.0, %v3148_v45  ;;  %v1040_v48 = vand.u32 2147483647, %v3158_v44  ;;  %v3173_v4 = vmul.f32 %v3082_v29, %v1367_v21 }
 0x170   : > { %v2148_v50 = vpop.eup %2147  ;;  %v1205_v31 = vadd.f32 1.0, %v1204_v43  ;;  %v1077_v25 = vsub.f32 0.0, %v1045_v2  ;;  %v3175_v9 = vsub.f32 0.0, %v1905_v38  ;;  %v1320_v12 = vmul.f32 0.6931472, %v2146_v15  ;;  %v874_v15 = vpop.xlane.xlu0 %873 }
 0x171   : > { %v3178_v0 = vmul.f32 %v3103_v59, %v1376_v30  ;;  %v3180_v23 = vsub.f32 0.0, %v1899_v35  ;;  %v1906_v7 = vclamps-f32 %v886_v6, 10.0  ;;  %vm3182_vm3 = vcmp.lt.f32.partialorder %v1369_v49, 0.0004427343 }
 0x172   : > { %v1207_v19 = vand.u32 2147483647, %v3127_v42  ;;  %v1046_v21 = vand.u32 2147483647, %v3160_v62  ;;  %v1072_v13 = vsub.f32 0.0, %v1040_v48  ;;  %v3193_v59 = vsel %vm1631_vm8, %v1576_v28, %v3011_v41 }
 0x173   : > { %v3189_v43 = vpop.eup %2149  ;;  %2159 = vlog2.f32 %v1273_v53  ;;  %v3200_v63 = vmul.f32 %v3127_v42, %v1205_v31  ;;  %v1135_v2 = vmul.f32 1.442695, %v1077_v25  ;;  %v1047_v30 = vand.u32 2147483647, %v3175_v9  ;;  %v890_v53 = vpop.xlane.xlu1 %889 }
 0x174   : > { %v1125_v57 = vmul.f32 1.442695, %v1072_v13  ;;  %v1326_v41 = vsel %vm3152_vm2, %v3124_v40, %v1320_v12  ;;  %vm3206_vm4 = vcmp.lt.f32.partialorder %v1378_v22, 0.0004427343  ;;  %v1276_v35 = vmul.f32 -0.5, %v3148_v45 }
 0x175   : > { %v2152_v38 = vpop.eup %2151  ;;  %v1041_v6 = vand.u32 2147483647, %v3180_v23  ;;  %v3212_v42 = vsub.f32 0.0, %v1906_v7  ;;  %v1365_v31 = vmul.f32 0.6931472, %v2148_v50  ;;  %v1327_v40 = vadd.f32 1.0, %v3189_v43 }
 0x176   : > { %v3214_v48 = vpop.eup %2153  ;;  %vm3216_vm5 = vcmp.lt.f32.partialorder %v1207_v19, 0.0004427343  ;;  %v1078_v22 = vsub.f32 0.0, %v1046_v21  ;;  %2161 = vpow2.f32 %v1125_v57  ;;  %v1279_v12 = vand.u32 2147483647, %v3148_v45 }
 0x177   : > { %v2156_v56 = vpop.eup %2155  ;;  %v1282_v13 = vadd.f32 1.0, %v3214_v48  ;;  %v1073_v29 = vsub.f32 0.0, %v1041_v6  ;;  %v1900_v7 = vclamps-f32 %v874_v15, 10.0  ;;  %2163 = vpow2.f32 %v1135_v2 }
 0x178   : > { %v3223_v61 = vpop.eup %2157  ;;  %v1079_v17 = vsub.f32 0.0, %v1047_v30  ;;  %v1048_v50 = vand.u32 2147483647, %v3212_v42  ;;  %v1908_v19 = vclamps-f32 %v890_v53, 10.0  ;;  %v3228_v8 = vsub.f32 %v1006_v1, %v1326_v41 }
 0x179   : > { %v1374_v21 = vmul.f32 0.6931472, %v2152_v38  ;;  %v1277_v57 = vadd.f32 1.0, %v1276_v35  ;;  %2165 = vlog2.f32 %v1282_v13  ;;  %v1210_v49 = vadd.f32 1.0, %v3223_v61 }
 0x17a   : > { %2167 = vlog2.f32 %v1327_v40  ;;  %v1137_v18 = vmul.f32 1.442695, %v1078_v22  ;;  %v1127_v6 = vmul.f32 1.442695, %v1073_v29  ;;  %v1371_v2 = vsel %vm3182_vm3, %v3173_v4, %v1365_v31 }
 0x17b   : > { %v1203_v30 = vmul.f32 0.6931472, %v2156_v56  ;;  %v1080_v15 = vsub.f32 0.0, %v1048_v50  ;;  %v3234_v20 = vsub.f32 0.0, %v1900_v7  ;;  %vm3236_vm7 = vcmp.lt.f32.partialorder %v1279_v12, 0.0004427343 }
 0x17c   : > { %2169 = vlog2.f32 %v1210_v49  ;;  %v1139_v1 = vmul.f32 1.442695, %v1079_v17  ;;  %v3240_v38 = vsub.f32 0.0, %v1908_v19  ;;  %v1580_v29 = vrot.slane %v3228_v8, %v2812_v24  ;;  %v888_v19 = vpop.xlane.xlu0 %887 }
 0x17d   : > { %v2160_v41 = vpop.eup %2159  ;;  %v1330_v35 = vmul.f32 -0.5, %v3189_v43  ;;  %2171 = vpow2.f32 %v1127_v6  ;;  %v1042_v4 = vand.u32 2147483647, %v3234_v20  ;;  %v1380_v11 = vsel %vm3206_vm4, %v3178_v0, %v1374_v21 }
 0x17e   : > { %v1285_v53 = vmul.f32 -0.5, %v3214_v48  ;;  %2173 = vpow2.f32 %v1137_v18  ;;  %v1050_v17 = vand.u32 2147483647, %v3240_v38  ;;  %v3253_v49 = vsub.f32 %v1011_v46, %v1371_v2 }
 0x17f   : > { %v1209_v31 = vsel %vm3216_vm5, %v3200_v63, %v1203_v30  ;;  %v1333_v40 = vand.u32 2147483647, %v3189_v43  ;;  %v1141_v22 = vmul.f32 1.442695, %v1080_v15  ;;  %v1275_v28 = vmul.f32 0.6931472, %v2160_v41 }
 0x180   : > { %v3259_v56 = vpop.eup %2161  ;;  %v1278_v0 = vmul.f32 %v3148_v45, %v1277_v57  ;;  %2175 = vpow2.f32 %v1139_v1  ;;  %v1074_v18 = vsub.f32 0.0, %v1042_v4  ;;  %v3264_v12 = vsub.f32 %v1012_v5, %v1380_v11 }
 0x181   : > { %v1331_v16 = vadd.f32 1.0, %v1330_v35  ;;  %v1002_v46 = vmin.f32 %v3112_v39, 0.0  ;;  %v994_v25 = vmin.f32 %v3132_v37, 0.0  ;;  %v3268_v63 = vpop.eup %2163  ;;  %v3272_v13 = vsub.f32 %v993_v14, %v1209_v31 }
 0x182   : > { %v1286_v7 = vadd.f32 1.0, %v1285_v53  ;;  %v1129_v50 = vmul.f32 1.442695, %v1074_v18  ;;  %v1082_v45 = vsub.f32 0.0, %v1050_v17  ;;  %vm3274_vm9 = vcmp.lt.f32.partialorder %v1333_v40, 0.0004427343 }
 0x183   : > { %v2166_v21 = vpop.eup %2165  ;;  %v1288_v5 = vand.u32 2147483647, %v3214_v48  ;;  %v1336_v39 = vadd.f32 1.0, %v3259_v56  ;;  %2177 = vpow2.f32 %v1141_v22  ;;  %v1281_v58 = vsel %vm3236_vm7, %v1278_v0, %v1275_v28 }
 0x184   : > { %v2168_v57 = vpop.eup %2167  ;;  %v1284_v14 = vmul.f32 0.6931472, %v2166_v21  ;;  %v1213_v6 = vmul.f32 -0.5, %v3223_v61  ;;  %v1014_v2 = vmin.f32 %v3160_v62, 0.0  ;;  %v1332_v30 = vmul.f32 %v3189_v43, %v1331_v16 }
 0x185   : > { %v1381_v15 = vadd.f32 1.0, %v3268_v63  ;;  %v1384_v1 = vmul.f32 -0.5, %v3268_v63  ;;  %v1907_v41 = vclamps-f32 %v888_v19, 10.0  ;;  %vm1635_vm10 = vcmask 1044484  }
 0x186   : > { %v2170_v35 = vpop.eup %2169  ;;  %v1528_v4 = vrot.slane %v3272_v13, %v2812_v24  ;;  %v1287_v26 = vmul.f32 %v3214_v48, %v1286_v7  ;;  %2179 = vpow2.f32 %v1129_v50  ;;  %v1145_v11 = vmul.f32 1.442695, %v1082_v45 }
 0x187   : > { %v3290_v53 = vpop.eup %2171  ;;  %v1449_v17 = vsub.f32 %v1001_v51, %v1281_v58  ;;  %v1329_v43 = vmul.f32 0.6931472, %v2168_v57  ;;  %vm3294_vm11 = vcmp.lt.f32.partialorder %v1288_v5, 0.0004427343  ;;  %2181 = vlog2.f32 %v1336_v39 }
 0x188   : > { %v3298_v40 = vpop.eup %2173  ;;  %v1290_v22 = vsel %vm3294_vm11, %v1287_v26, %v1284_v14  ;;  %v1214_v28 = vadd.f32 1.0, %v1213_v6  ;;  %v1345_v48 = vadd.f32 1.0, %v3290_v53  ;;  %2183 = vpow2.f32 %v1145_v11 }
 0x189   : > { %vm1637_vm12 = vcmask 1045509   ;;  %2185 = vlog2.f32 %v1381_v15  ;;  %v1385_v0 = vadd.f32 1.0, %v1384_v1  ;;  %v1216_v33 = vand.u32 2147483647, %v3223_v61 }
 0x18a   : > { %v3304_v51 = vsub.f32 0.0, %v1907_v41  ;;  %v3306_v18 = vpop.eup %2175  ;;  %v1387_v16 = vand.u32 2147483647, %v3268_v63  ;;  %v1212_v7 = vmul.f32 0.6931472, %v2170_v35  ;;  %v1008_v50 = vmin.f32 %v3158_v44, 0.0 }
 0x18b   : > { %2187 = vlog2.f32 %v1345_v48  ;;  %v1335_v45 = vsel %vm3274_vm9, %v1332_v30, %v1329_v43  ;;  %v1450_v19 = vsub.f32 %v1002_v46, %v1290_v22  ;;  %v1390_v21 = vadd.f32 1.0, %v3298_v40 }
 0x18c   : > { %v1339_v5 = vmul.f32 -0.5, %v3259_v56  ;;  %v1560_v39 = vrot.slane %v1449_v17, %v2812_v24  ;;  %v1215_v57 = vmul.f32 %v3223_v61, %v1214_v28  ;;  %v1015_v58 = vmin.f32 %v3175_v9, 0.0 }
 0x18d   : > { %v1049_v14 = vand.u32 2147483647, %v3304_v51  ;;  %v3318_v6 = vpop.eup %2177  ;;  %v3321_v15 = vmul.f32 %v3268_v63, %v1385_v0  ;;  %vm3323_vm14 = vcmp.lt.f32.partialorder %v1216_v33, 0.0004427343  ;;  %v1399_v46 = vadd.f32 1.0, %v3306_v18 }
 0x18e   : > { %v1009_v30 = vmin.f32 %v3180_v23, 0.0  ;;  %v3642_v1 = vmin.f32 %v3063_v32, 0.0  ;;  %v1218_v41 = vsel %vm3323_vm14, %v1215_v57, %v1212_v7  ;;  %v1348_v35 = vmul.f32 -0.5, %v3290_v53 }
 0x18f   : > { %v1081_v26 = vsub.f32 0.0, %v1049_v14  ;;  %2189 = vlog2.f32 %v1390_v21  ;;  %v1340_v63 = vadd.f32 1.0, %v1339_v5  ;;  %v1564_v11 = vrot.slane %v1450_v19, %v2812_v24 }
 0x190   : > { %v3331_v61 = vsub.f32 %v3642_v1, %v1335_v45  ;;  %vm1639_vm15 = vcmask 1046534   ;;  %v3337_v17 = vpop.eup %2179  ;;  %v1408_v43 = vadd.f32 1.0, %v3318_v6  ;;  %vm1641_vm0 = vcmask 1047559  }
 0x191   : > { %v1143_v31 = vmul.f32 1.442695, %v1081_v26  ;;  %v3643_v32 = vrot.slane %v3025_v52, %v2812_v24  ;;  %v2182_v28 = vpop.eup %2181  ;;  %v1442_v48 = vsub.f32 %v994_v25, %v1218_v41  ;;  %2191 = vlog2.f32 %v1399_v46 }
 0x192   : > { %v1354_v0 = vadd.f32 1.0, %v3337_v17  ;;  %v3644_v33 = vrot.slane %v3168_v27, %v2812_v24  ;;  %v3352_v45 = vpop.eup %2183  ;;  %v1342_v19 = vand.u32 2147483647, %v3259_v56  ;;  %v1349_v21 = vadd.f32 1.0, %v1348_v35 }
 0x193   : > { %v1646_v22 = vsel %vm1635_vm10, %v3643_v32, %v3117_v54  ;;  %2193 = vpow2.f32 %v1143_v31  ;;  %v2186_v54 = vpop.eup %2185  ;;  %vm3356_vm1 = vcmp.lt.f32.partialorder %v1387_v16, 0.0004427343  ;;  %v1426_v25 = vadd.f32 1.0, %v3352_v45 }
 0x194   : > { %v1647_v7 = vsel %vm1637_vm12, %v3644_v33, %v1646_v22  ;;  %2195 = vlog2.f32 %v1354_v0  ;;  %vm1668_vm2 = vcmask 64512   ;;  %v1393_v57 = vmul.f32 -0.5, %v3298_v40 }
 0x195   : > { %v1648_v52 = vsel %vm1639_vm15, %v1560_v39, %v1647_v7  ;;  %v2188_v5 = vpop.eup %2187  ;;  %v1338_v14 = vmul.f32 0.6931472, %v2182_v28  ;;  %v1351_v60 = vand.u32 2147483647, %v3290_v53  ;;  %2197 = vlog2.f32 %v1408_v43 }
 0x196   : > { %v1649_v27 = vsel %vm1641_vm0, %v1564_v11, %v1648_v52  ;;  %v1341_v39 = vmul.f32 %v3259_v56, %v1340_v63  ;;  %v1402_v16 = vmul.f32 -0.5, %v3306_v18  ;;  %v1347_v46 = vmul.f32 0.6931472, %v2188_v5 }
 0x197   : > { %v1532_v1 = vrot.slane %v1442_v48, %v2812_v24  ;;  %v1357_v41 = vmul.f32 -0.5, %v3337_v17  ;;  %2199 = vlog2.f32 %v1426_v25  ;;  %v1672_v35 = vsel %vm1668_vm2, %v1649_v27, 0.0 }
 0x198   : > { %v3647_v26 = vrot.slane %v3121_v36, %v2812_v24  ;;  %v3374_v31 = vmul.f32 0.6931472, %v2186_v54  ;;  %vm3376_vm3 = vcmp.lt.f32.partialorder %v1342_v19, 0.0004427343  ;;  %v1350_v63 = vmul.f32 %v3290_v53, %v1349_v21  ;;  %1673 = vadd.xlane.f32.xlu1 %v1672_v35 }
 0x199   : > { %v3650_v43 = vrot.slane %v3041_v34, %v2812_v24  ;;  %v1396_v22 = vand.u32 2147483647, %v3298_v40  ;;  %v1344_v36 = vsel %vm3376_vm3, %v1341_v39, %v1338_v14  ;;  %vm3388_vm4 = vcmp.lt.f32.partialorder %v1351_v60, 0.0004427343  ;;  %v2190_v48 = vpop.eup %2189 }
 0x19a   : > { %v1634_v11 = vsel %vm1633_vm13, %v3647_v26, %v3049_v10  ;;  %v3653_v28 = vrot.slane %v3164_v47, %v2812_v24  ;;  %v1394_v0 = vadd.f32 1.0, %v1393_v57  ;;  %v1403_v33 = vadd.f32 1.0, %v1402_v16 }
 0x19b   : > { %v1636_v32 = vsel %vm1635_vm10, %v3650_v43, %v1634_v11  ;;  %v1353_v34 = vsel %vm3388_vm4, %v1350_v63, %v1347_v46  ;;  %v1584_v19 = vrot.slane %v3331_v61, %v2812_v24  ;;  %v1405_v21 = vand.u32 2147483647, %v3306_v18  ;;  %v2192_v54 = vpop.eup %2191 }
 0x19c   : > { %v1638_v53 = vsel %vm1637_vm12, %v3653_v28, %v1636_v32  ;;  %v1358_v52 = vadd.f32 1.0, %v1357_v41  ;;  %v1456_v25 = vsub.f32 %v1008_v50, %v1344_v36  ;;  %v1411_v27 = vmul.f32 -0.5, %v3318_v6 }
 0x19d   : > { %v1640_v7 = vsel %vm1639_vm15, %v1528_v4, %v1638_v53  ;;  %v1360_v5 = vand.u32 2147483647, %v3337_v17  ;;  %v3411_v57 = vpop.eup %2193  ;;  %v1389_v4 = vsel %vm3356_vm1, %v3321_v15, %v3374_v31  ;;  %vm3417_vm5 = vcmp.lt.f32.partialorder %v1396_v22, 0.0004427343 }
 0x19e   : > { %v1642_v47 = vsel %vm1641_vm0, %v1532_v1, %v1640_v7  ;;  %v1457_v44 = vsub.f32 %v1009_v30, %v1353_v34  ;;  %v1010_v50 = vmin.f32 %v3234_v20, 0.0  ;;  %v2196_v14 = vpop.eup %2195  ;;  %v1395_v60 = vmul.f32 %v3298_v40, %v1394_v0  ;;  %v356_v1 = vpop.xlane.xlu0 %355 }
 0x19f   : > { %v1669_v13 = vsel %vm1668_vm2, %v1642_v47, 0.0  ;;  %v1404_v39 = vmul.f32 %v3306_v18, %v1403_v33  ;;  %v1429_v16 = vmul.f32 -0.5, %v3352_v45  ;;  %v1417_v37 = vadd.f32 1.0, %v3411_v57  ;;  %v2198_v15 = vpop.eup %2197 }
 0x1a0   : > { %1670 = vadd.xlane.f32.xlu0 %v1669_v13  ;;  %v1392_v46 = vmul.f32 0.6931472, %v2190_v48  ;;  %vm3428_vm7 = vcmp.lt.f32.partialorder %v1405_v21, 0.0004427343  ;;  %v1356_v23 = vmul.f32 0.6931472, %v2196_v14  ;;  %v1359_v30 = vmul.f32 %v3337_v17, %v1358_v52 }
 0x1a1   : > { %v1588_v20 = vrot.slane %v1456_v25, %v2812_v24  ;;  %v1412_v41 = vadd.f32 1.0, %v1411_v27  ;;  %vm1361_vm9 = vcmp.lt.f32.partialorder %v1360_v5, 0.0004427343  ;;  %2201 = vlog2.f32 %v1417_v37  ;;  %v2200_v40 = vpop.eup %2199 }
 0x1a2   : > { %v1401_v18 = vmul.f32 0.6931472, %v2192_v54  ;;  %v1592_v35 = vrot.slane %v1457_v44, %v2812_v24  ;;  %v1414_v26 = vand.u32 2147483647, %v3318_v6  ;;  %v1362_v11 = vsel %vm1361_vm9, %v1359_v30, %v1356_v23  ;;  %v358_v23 = vpop.xlane.xlu1 %357 }
 0x1a3   : > { %v1410_v31 = vmul.f32 0.6931472, %v2198_v15  ;;  %v1458_v56 = vsub.f32 %v1010_v50, %v1362_v11  ;;  %v1430_v63 = vadd.f32 1.0, %v1429_v16  ;;  %v1652_v17 = vsel %vm1633_vm13, %v1580_v29, %v3193_v59 }
 0x1a4   : > { %v1398_v43 = vsel %vm3417_vm5, %v1395_v60, %v1392_v46  ;;  %v1432_v32 = vand.u32 2147483647, %v3352_v45  ;;  %v1420_v22 = vmul.f32 -0.5, %v3411_v57  ;;  %v1653_v36 = vsel %vm1635_vm10, %v1584_v19, %v1652_v17 }
 0x1a5   : > { %v1413_v10 = vmul.f32 %v3318_v6, %v1412_v41  ;;  %v1428_v28 = vmul.f32 0.6931472, %v2200_v40  ;;  %v1596_v53 = vrot.slane %v1458_v56, %v2812_v24  ;;  %v1654_v48 = vsel %vm1637_vm12, %v1588_v20, %v1653_v36  ;;  %v360_v20 = vpop.xlane.xlu0 %359 }
 0x1a6   : > { %v1407_v8 = vsel %vm3428_vm7, %v1404_v39, %v1401_v18  ;;  %v1016_v59 = vmin.f32 %v3212_v42, 0.0  ;;  %vm3452_vm11 = vcmp.lt.f32.partialorder %v1414_v26, 0.0004427343  ;;  %v1655_v0 = vsel %vm1639_vm15, %v1592_v35, %v1654_v48  ;;  %v3490_v11 = vpop.xlane.xlu1 %361 }
 0x1a7   : > { %v3660_v33 = vmin.f32 %v3136_v55, 0.0  ;;  %v1416_v6 = vsel %vm3452_vm11, %v1413_v10, %v1410_v31  ;;  %v1431_v7 = vmul.f32 %v3352_v45, %v1430_v63  ;;  %v1656_v19 = vsel %vm1641_vm0, %v1596_v53, %v1655_v0 }
 0x1a8   : > { %v1462_v21 = vsub.f32 %v1014_v2, %v1398_v43  ;;  %vm1433_vm14 = vcmp.lt.f32.partialorder %v1432_v32, 0.0004427343  ;;  %v1421_v42 = vadd.f32 1.0, %v1420_v22  ;;  %v1675_v52 = vsel %vm1668_vm2, %v1656_v19, 0.0 }
 0x1a9   : > { %v1461_v34 = vsub.f32 %v3660_v33, %v1389_v4  ;;  %v1463_v47 = vsub.f32 %v1015_v58, %v1407_v8  ;;  %v1434_v54 = vsel %vm1433_vm14, %v1431_v7, %v1428_v28  ;;  %v1423_v55 = vand.u32 2147483647, %v3411_v57  ;;  %1676 = vadd.xlane.f32.xlu0 %v1675_v52 }
 0x1aa   : > { %v1600_v25 = vrot.slane %v3253_v49, %v2812_v24  ;;  %v1604_v45 = vrot.slane %v3264_v12, %v2812_v24  ;;  %v1464_v27 = vsub.f32 %v1016_v59, %v1416_v6  ;;  %v1018_v62 = vmin.f32 %v3240_v38, 0.0 }
 0x1ab   : > { %v2202_v2 = vpop.eup %2201  ;;  %v1608_v5 = vrot.slane %v1461_v34, %v2812_v24  ;;  %v1612_v13 = vrot.slane %v1462_v21, %v2812_v24  ;;  %v1422_v4 = vmul.f32 %v3411_v57, %v1421_v42  ;;  %v1616_v61 = vrot.slane %v1463_v47, %v2812_v24 }
 0x1ac   : > { %v1466_v9 = vsub.f32 %v1018_v62, %v1434_v54  ;;  %v1419_v58 = vmul.f32 0.6931472, %v2202_v2  ;;  %v1017_v44 = vmin.f32 %v3304_v51, 0.0  ;;  %vm1424_vm1 = vcmp.lt.f32.partialorder %v1423_v55, 0.0004427343 }
 0x1ad   : > { %v1657_v49 = vsel %vm1629_vm6, %v1604_v45, %v1600_v25  ;;  %v1620_v12 = vrot.slane %v1464_v27, %v2812_v24  ;;  %v1873_v30 = vclamps-f32 %v356_v1, 10.0  ;;  %v1874_v41 = vclamps-f32 %v358_v23, 10.0 }
 0x1ae   : > { %v1425_v50 = vsel %vm1424_vm1, %v1422_v4, %v1419_v58  ;;  %v1658_v38 = vsel %vm1631_vm8, %v1608_v5, %v1657_v49  ;;  %v1628_v60 = vrot.slane %v1466_v9, %v2812_v24  ;;  %v1875_v40 = vclamps-f32 %v360_v20, 10.0 }
 0x1af   : > { %v1465_v14 = vsub.f32 %v1017_v44, %v1425_v50  ;;  %v1659_v39 = vsel %vm1633_vm13, %v1612_v13, %v1658_v38  ;;  %v375_v18 = vand.u32 2147483647, %v1873_v30  ;;  %v376_v35 = vand.u32 2147483647, %v1874_v41 }
 0x1b0   : > { %v1660_v57 = vsel %vm1635_vm10, %v1616_v61, %v1659_v39  ;;  %v1876_v63 = vclamps-f32 %v3490_v11, 10.0  ;;  %v371_v44 = vmin.f32 %v1873_v30, 0.0  ;;  %v372_v49 = vmin.f32 %v1874_v41, 0.0 }
 0x1b1   : > { %v1624_v16 = vrot.slane %v1465_v14, %v2812_v24  ;;  %v1661_v37 = vsel %vm1637_vm12, %v1620_v12, %v1660_v57  ;;  %v377_v24 = vand.u32 2147483647, %v1875_v40  ;;  %v379_v26 = vsub.f32 0.0, %v375_v18 }
 0x1b2   : > { %v380_v31 = vsub.f32 0.0, %v376_v35  ;;  %v378_v22 = vand.u32 2147483647, %v1876_v63  ;;  %v1695_v1 = vstv %s1909_s5  ;;  %v1693_v30 = vadd.s32 16, %v2625_v3 }
 0x1b3   : > { %v1662_v51 = vsel %vm1639_vm15, %v1624_v16, %v1661_v37  ;;  %v381_v56 = vsub.f32 0.0, %v377_v24  ;;  %v383_v17 = vmul.f32 1.442695, %v379_v26  ;;  %v1692_v16 = vadd.s32 8, %v2625_v3 }
 0x1b4   : > { %v1663_v15 = vsel %vm1641_vm0, %v1628_v60, %v1662_v51  ;;  %v385_v43 = vmul.f32 1.442695, %v380_v31  ;;  %v382_v36 = vsub.f32 0.0, %v378_v22  ;;  %v373_v60 = vmin.f32 %v1875_v40, 0.0 }
 0x1b5   : > { %v1678_v46 = vsel %vm1668_vm2, %v1663_v15, 0.0  ;;  %v387_v32 = vmul.f32 1.442695, %v381_v56  ;;  %2203 = vpow2.f32 %v383_v17  ;;  %v1701_v18 = vstv %s1700_s26 }
 0x1b6   : > { %1679 = vadd.xlane.f32.xlu1 %v1678_v46  ;;  %2205 = vpow2.f32 %v385_v43  ;;  %v389_v10 = vmul.f32 1.442695, %v382_v36  ;;  %v1697_v40 = vadd.s32 %v1695_v1, %v1692_v16  ;;  %v1696_v26 = vadd.s32 %v1695_v1, %v2625_v3 }
 0x1b7   : > { %2207 = vpow2.f32 %v387_v32  ;;  %v1698_v22 = vadd.s32 %v1695_v1, %v1693_v30  ;;  %v374_v36 = vmin.f32 %v1876_v63, 0.0  ;;  %vm1710_vm2 = vcmask 7168  }
 0x1b8   : > { %2209 = vpow2.f32 %v389_v10  ;;  %vm1703_vm12 = vcmp.lt.s32.totalorder %v1697_v40, %v1701_v18  ;;  %vm1702_vm15 = vcmp.lt.s32.totalorder %v1696_v26, %v1701_v18 }
 0x1b9   : > { %vm1704_vm0 = vcmp.lt.s32.totalorder %v1698_v22, %v1701_v18 }
 0x1bf   : > { %v2204_v28 = vpop.eup %2203 }
 0x1c0   : > { %v2206_v53 = vpop.eup %2205  ;;  %v391_v8 = vadd.f32 1.0, %v2204_v28  ;;  %v394_v33 = vmul.f32 -0.5, %v2204_v28  ;;  %v397_v47 = vand.u32 2147483647, %v2204_v28 }
 0x1c1   : > { %v2208_v48 = vpop.eup %2207  ;;  %v400_v59 = vadd.f32 1.0, %v2206_v53  ;;  %v403_v34 = vmul.f32 -0.5, %v2206_v53  ;;  %v406_v54 = vand.u32 2147483647, %v2206_v53 }
 0x1c2   : > { %v409_v29 = vadd.f32 1.0, %v2208_v48  ;;  %2211 = vlog2.f32 %v391_v8  ;;  %v2210_v0 = vpop.eup %2209  ;;  %v412_v7 = vmul.f32 -0.5, %v2208_v48  ;;  %v395_v21 = vadd.f32 1.0, %v394_v33 }
 0x1c3   : > { %2213 = vlog2.f32 %v400_v59  ;;  %v418_v6 = vadd.f32 1.0, %v2210_v0  ;;  %v404_v42 = vadd.f32 1.0, %v403_v34  ;;  %v415_v45 = vand.u32 2147483647, %v2208_v48 }
 0x1c4   : > { %2215 = vlog2.f32 %v409_v29  ;;  %v413_v55 = vadd.f32 1.0, %v412_v7  ;;  %v396_v62 = vmul.f32 %v2204_v28, %v395_v21  ;;  %vm3495_vm6 = vcmp.lt.f32.partialorder %v397_v47, 0.0004427343 }
 0x1c5   : > { %2217 = vlog2.f32 %v418_v6  ;;  %v405_v5 = vmul.f32 %v2206_v53, %v404_v42  ;;  %vm3499_vm8 = vcmp.lt.f32.partialorder %v406_v54, 0.0004427343  ;;  %v421_v61 = vmul.f32 -0.5, %v2210_v0 }
 0x1c6   : > { %v414_v4 = vmul.f32 %v2208_v48, %v413_v55  ;;  %vm3503_vm13 = vcmp.lt.f32.partialorder %v415_v45, 0.0004427343  ;;  %v424_v23 = vand.u32 2147483647, %v2210_v0  ;;  %v1694_v8 = vadd.s32 24, %v2625_v3 }
 0x1c7   : > { %v422_v37 = vadd.f32 1.0, %v421_v61 }
 0x1c8   : > { %vm425_vm10 = vcmp.lt.f32.partialorder %v424_v23, 0.0004427343  ;;  %v1699_v34 = vadd.s32 %v1695_v1, %v1694_v8 }
 0x1c9   : > { %v423_v56 = vmul.f32 %v2210_v0, %v422_v37 }
 0x1ca   : > { %vm1705_vm3 = vcmp.lt.s32.totalorder %v1699_v34, %v1701_v18 }
 0x1cc   : > { %v2212_v19 = vpop.eup %2211 }
 0x1cd   : > { %v2214_v52 = vpop.eup %2213  ;;  %v393_v27 = vmul.f32 0.6931472, %v2212_v19 }
 0x1ce   : > { %v2216_v25 = vpop.eup %2215  ;;  %v402_v2 = vmul.f32 0.6931472, %v2214_v52 }
 0x1cf   : > { %v411_v58 = vmul.f32 0.6931472, %v2216_v25  ;;  %v399_v50 = vsel %vm3495_vm6, %v396_v62, %v393_v27  ;;  %v2218_v51 = vpop.eup %2217 }
 0x1d0   : > { %v408_v38 = vsel %vm3499_vm8, %v405_v5, %v402_v2  ;;  %v427_v15 = vsub.f32 %v371_v44, %v399_v50  ;;  %v420_v31 = vmul.f32 0.6931472, %v2218_v51 }
 0x1d1   : > { %v417_v39 = vsel %vm3503_vm13, %v414_v4, %v411_v58  ;;  %v428_v46 = vsub.f32 %v372_v49, %v408_v38 }
 0x1d2   : > { %v429_v41 = vsub.f32 %v373_v60, %v417_v39  ;;  %v431_v43 = vsub.f32 0.0, %v427_v15  ;;  %v426_v48 = vsel %vm425_vm10, %v423_v56, %v420_v31 }
 0x1d3   : > { %v432_v17 = vsub.f32 0.0, %v428_v46  ;;  %v430_v33 = vsub.f32 %v374_v36, %v426_v48 }
 0x1d4   : > { %v433_v53 = vsub.f32 0.0, %v429_v41 }
 0x1d5   : > { %v434_v19 = vsub.f32 0.0, %v430_v33 }
 0x225   : > { %v1674_v57 = vpop.xlane.xlu1 %1673 }
 0x226   : > { %v1682_v35 = vsub.f32 0.0, %v1674_v57 }
 0x228   : > { %v1686_v10 = vadd.f32 %v1682_v35, %v432_v17 }
 0x22a   : > { %v1707_v29 = vsel %vm1703_vm12, %v1686_v10, 0.0 }
 0x22b   : > { %v1712_v7 = vsel %vm1710_vm2, %v1707_v29, 0.0 }
 0x22d   : > { %v1671_v14 = vpop.xlane.xlu0 %1670 }
 0x22e   : > { %v1681_v24 = vsub.f32 0.0, %v1671_v14 }
 0x230   : > { %v1685_v28 = vadd.f32 %v1681_v24, %v431_v43 }
 0x232   : > { %v1706_v0 = vsel %vm1702_vm15, %v1685_v28, 0.0 }
 0x233   : > { %v1711_v11 = vsel %vm1710_vm2, %v1706_v0, 0.0 }
 0x234   : > { %v1713_v52 = vadd.f32 %v1712_v7, %v1711_v11 }
 0x236   : > { %v1677_v20 = vpop.xlane.xlu0 %1676 }
 0x237   : > { %v1683_v32 = vsub.f32 0.0, %v1677_v20 }
 0x239   : > { %v1687_v59 = vadd.f32 %v1683_v32, %v433_v53 }
 0x23b   : > { %v1708_v6 = vsel %vm1704_vm0, %v1687_v59, 0.0 }
 0x23c   : > { %v1714_v42 = vsel %vm1710_vm2, %v1708_v6, 0.0 }
 0x23d   : > { %v1715_v54 = vadd.f32 %v1714_v42, %v1713_v52 }
 0x243   : > { %v1680_v63 = vpop.xlane.xlu1 %1679 }
 0x244   : > { %v1684_v21 = vsub.f32 0.0, %v1680_v63 }
 0x246   : > { %v1688_v3 = vadd.f32 %v1684_v21, %v434_v19 }
 0x248   : > { %v1709_v47 = vsel %vm1705_vm3, %v1688_v3, 0.0 }
 0x249   : > { %v1716_v55 = vsel %vm1710_vm2, %v1709_v47, 0.0 }
 0x24a   : > { %v1717_v25 = vadd.f32 %v1716_v55, %v1715_v54 }
 0x24c   : > { %1718 = vadd.xlane.f32.xlu0 %v1717_v25 }
 0x2d9   : > { %v1719_v45 = vpop.xlane.xlu0 %1718 }
 0x2da   : > { %v1720_v27 = vrot.slane %v1719_v45, 4 }
 0x2dc   : > { %v1721_v62 = vadd.f32 %v1720_v27, %v1719_v45 }
 0x2de   : > { %v1722_v2 = vrot.slane %v1721_v62, 2 }
 0x2e0   : > { %v1723_v5 = vadd.f32 %v1722_v2, %v1721_v62 }
 0x2e2   : > { %v1724_v13 = vrot.slane %v1723_v5, 1 }
 0x2e4   : > { %v1725_v9 = vadd.f32 %v1724_v13, %v1723_v5 }
 0x2e6   : > { %2014 = vpush %v1725_v9 }
 0x317   : > { %s2015_s29 = spop %2014 }
 0x318   : > { %v1727_v58 = vstv %s2015_s29 }
 0x319   : > { %1728 = vst [vmem:[%s267_s12] sm:$0xff] %v1727_v58 }
 0x31a   : > { %2322 = shalt.err (!%p2319_p9)
}
 0x31b   : > { %s2323_s1 = scalar_lea.hbm %s3531_s30, 128  ;;  %s2327_s21 = scalar_lea.hbm %s3576_s4, 512 }
 0x31c   : > { %p2324_p11 = scmp.ne.s32.totalorder %s3531_s30, %s2323_s1  ;;  %p2328_p4 = scmp.lt.u32.totalorder %s3531_s30, %s3576_s4 }
 0x31d   : > { %p2329_p1 = scmp.lt.u32.totalorder %s2327_s21, %s2323_s1  ;;  %p2331_p12 = scmp.lt.u32.totalorder %s2323_s1, %s3531_s30 }
 0x31e   : > { %p2325_p7 = pnand %p2324_p11, %p3667_p5 }
 0x31f   : > { %p2330_p0 = por %p2329_p1, %p2328_p4 }
 0x320   : > { %p2326_p2 = pneg %p2325_p7 }
 0x321   : > { %p2332_p6 = por %p2331_p12, %p2330_p0 }
 0x323   : > { %p2333_p10 = pnand %p2332_p6, %p2326_p2 }
 0x325   : > { %2336 = shalt.err (!%p2333_p10)
}
 0x326   : > { %2022 = dma.vmem_to_hbm [thread:$0]  (%p3667_p5), %s3526_s23, 128, %s3531_s30, %s1730_s15  }
 0x327 PF: > { %p2039_p13 = scmp.ge.s32.totalorder %s2379_s20, 2  ;;  %s1755_s5 = sand.u32 1, %s2367_s17  }
 0x328   : > { %p3668_p3 = scmp.ne.s32.totalorder %s3586_s28, 0  ;;  %s1756_s14 = scalar_lea.sflag [#allocation6], %s1755_s5 }
 0x32a   : > { %p2035_p8 = pnand %p2039_p13, %p3668_p3 }
 0x32c   : > { %2362 = dma.done.wait (!%p2035_p8), %s1756_s14, 128  }
 0x32d   : > { %2364 = vsyncadd (!%p2035_p8), %s1756_s14, 4294967168  ;;  %p21_p9 = scmp.ge.s32.totalorder %s2441_s22, 6   ;;  %s3669_s17 = smov %s2371_s18 }
 0x32e   : > { %s3670_s18 = smov %s2375_s19  ;;  %s3671_s19 = smov %s2453_s25 }
 0x32f   : > { %s3672_s20 = smov %s2441_s22  ;;  %23 = sbr.rel (!%p21_p9) target bundleno = 10 (0xa), region = 101 }
 0x336   :  { %1761 = vsyncpa [#allocation5], 1 }
 0x337   :  { %1763 = vsyncpa [#allocation5 + $0x1], 1 }
 0x338   :  { %1764 = vsyncpa [#allocation8], 1 }
 0x339   :  { %1766 = vsyncpa [#allocation8 + $0x1], 1 }
 0x33a   :  { %1767 = vsyncpa [#allocation6], 1 }
 0x33b   :  { %1769 = vsyncpa [#allocation6 + $0x1], 1 }

</bundles_post_ra>
